<compile_context>
chip_gen: v7x
topology: tpu7x:2x2x1
jax: 0.10.0
libtpu: 0.0.40
codegen_flags: <defaults>
</compile_context>

<pallas_src>
import functools
import math

import jax
import jax.numpy as jnp
from jax.experimental import pallas as pl
from jax.experimental.pallas import tpu as pltpu


def _round_up(x, n):
    return ((x + n - 1) // n) * n


def _gelu_new(x):
    # GPT-2 "new" gelu: 0.5*x*(1 + tanh(sqrt(2/pi)*(x + 0.044715*x^3)))
    c = math.sqrt(2.0 / math.pi)
    return 0.5 * x * (1.0 + jnp.tanh(c * (x + 0.044715 * x * x * x)))


def _pick_row_tile(m, tm):
    """Largest multiple of 8 that is <= tm and divides m exactly (0 if none)."""
    t = (min(tm, m) // 8) * 8
    while t >= 8 and m % t != 0:
        t -= 8
    return t if t >= 8 else 0


# --------------------------- kernel 1: LN1 + attention + residual ---------------------------
def _attn_block_kernel(resid_ref, ln_w_ref, ln_b_ref,
                       wqkv_ref, bqkv_ref, wo_ref, bo_ref,
                       out_ref, z_ref, *, n_heads, d_head, ln_eps):
    x = resid_ref[0].astype(jnp.float32)                     # (S, D)
    s = x.shape[0]
    hdh = n_heads * d_head

    # LayerNorm 1 (mean-of-squares variance, eps inside sqrt — matches the module)
    mean = jnp.mean(x, axis=-1, keepdims=True)
    xc = x - mean
    scale = jnp.sqrt(jnp.mean(xc * xc, axis=-1, keepdims=True) + ln_eps)
    xn = (xc / scale) * ln_w_ref[...] + ln_b_ref[...]        # (S, D) f32

    # Fused QKV projection: one MXU pass, bf16 operands, f32 accumulate.
    qkv = jnp.dot(xn.astype(jnp.bfloat16), wqkv_ref[...],
                  preferred_element_type=jnp.float32) + bqkv_ref[...]   # (S, 3*hdh)
    qkv_bf = qkv.astype(jnp.bfloat16)

    # causal mask: key_pos > query_pos -> -inf
    qi = jax.lax.broadcasted_iota(jnp.int32, (s, s), 0)
    ki = jax.lax.broadcasted_iota(jnp.int32, (s, s), 1)
    causal = ki > qi
    inv_sqrt_dh = 1.0 / math.sqrt(d_head)

    # Static unroll over heads; every head's result goes straight to the VMEM
    # scratch z_ref, so no list/concatenate keeps per-head intermediates alive.
    # TODO(synk): for d_head=64 write heads in pairs so the lane offset is a
    # multiple of 128 (unmasked vst); for seq >= ~512 switch to flash-style kv
    # tiling (online softmax + causal block skipping) to bound the SxS tile.
    for h in range(n_heads):
        lo = h * d_head
        qh = qkv_bf[:, lo:lo + d_head]
        kh = qkv_bf[:, hdh + lo:hdh + lo + d_head]
        vh = qkv_bf[:, 2 * hdh + lo:2 * hdh + lo + d_head]
        sc = jnp.einsum('qe,ke->qk', qh, kh,
                        preferred_element_type=jnp.float32) * inv_sqrt_dh
        sc = jnp.where(causal, -jnp.inf, sc)
        m = jnp.max(sc, axis=-1, keepdims=True)
        e = jnp.exp(sc - m)
        # Causal mask always keeps the diagonal -> softmax never NaN; the module's
        # torch.where(isnan, 0, pattern) is a no-op here.
        p = e * pl.reciprocal(jnp.sum(e, axis=-1, keepdims=True), approx=True)
        zh = jnp.dot(p.astype(jnp.bfloat16), vh, preferred_element_type=jnp.float32)
        z_ref[:, lo:lo + d_head] = zh.astype(jnp.bfloat16)

    # Single full-contraction output projection from the scratch buffer.
    attn_out = jnp.dot(z_ref[...], wo_ref[...],
                       preferred_element_type=jnp.float32) + bo_ref[...]
    out_ref[0] = (x + attn_out).astype(out_ref.dtype)        # residual add
    # TODO(synk): add a q-tile grid axis ("parallel") so both v7x TensorCores get
    # work when batch is small/odd.


# --------------------------- kernel 2: LN2 + MLP + residual ---------------------------
def _mlp_block_kernel(resid_ref, ln_w_ref, ln_b_ref,
                      win_ref, bin_ref, wout_ref, bout_ref,
                      out_ref, xn_ref, acc_ref, *, ln_eps):
    j = pl.program_id(1)                                      # d_mlp reduction axis

    @pl.when(j == 0)
    def _():
        x = resid_ref[...].astype(jnp.float32)                # (TM, D)
        mean = jnp.mean(x, axis=-1, keepdims=True)
        xc = x - mean
        scale = jnp.sqrt(jnp.mean(xc * xc, axis=-1, keepdims=True) + ln_eps)
        xn = (xc / scale) * ln_w_ref[...] + ln_b_ref[...]
        xn_ref[...] = xn.astype(jnp.bfloat16)                 # reused across d_mlp tiles
        acc_ref[...] = jnp.zeros_like(acc_ref)

    pre = jnp.dot(xn_ref[...], win_ref[...],
                  preferred_element_type=jnp.float32) + bin_ref[...]    # (TM, TK)
    post = _gelu_new(pre)
    acc_ref[...] += jnp.dot(post.astype(jnp.bfloat16), wout_ref[...],
                            preferred_element_type=jnp.float32)

    @pl.when(j == pl.num_programs(1) - 1)
    def _():
        x = resid_ref[...].astype(jnp.float32)
        out_ref[...] = (x + acc_ref[...] + bout_ref[...]).astype(out_ref.dtype)


# --------------------------- wrapper ---------------------------
@functools.partial(jax.jit,
                   static_argnames=("n_heads", "d_head", "ln_eps", "tm", "tk_mlp"))
def transformer_block(resid_pre,
                      ln1_w, ln1_b,
                      w_q, b_q, w_k, b_k, w_v, b_v, w_o, b_o,
                      ln2_w, ln2_b,
                      w_in, b_in, w_out, b_out,
                      *, n_heads, d_head, ln_eps=1e-5, tm=256, tk_mlp=512):
    batch, seq, d_model = resid_pre.shape
    d_mlp = w_in.shape[1]
    hdh = n_heads * d_head
    dtype = resid_pre.dtype
    itemsize = jnp.dtype(dtype).itemsize
    mm_dtype = jnp.bfloat16          # MXU operand dtype (accumulation stays f32)

    # Flatten per-head weights into one fused lane-dense QKV matrix:
    # q[b,q,h,e] = sum_d x[b,q,d] W_Q[h,d,e]  ->  Wqkv[d, h*Dh+e] (cols = [Q|K|V])
    wq2 = jnp.transpose(w_q, (1, 0, 2)).reshape(d_model, hdh)
    wk2 = jnp.transpose(w_k, (1, 0, 2)).reshape(d_model, hdh)
    wv2 = jnp.transpose(w_v, (1, 0, 2)).reshape(d_model, hdh)
    wqkv = jnp.concatenate([wq2, wk2, wv2], axis=1).astype(mm_dtype)   # (D, 3*hdh)
    bqkv = jnp.concatenate([b_q.reshape(1, hdh), b_k.reshape(1, hdh),
                            b_v.reshape(1, hdh)], axis=1).astype(jnp.float32)
    wo2 = w_o.reshape(hdh, d_model).astype(mm_dtype)   # b_O/n_heads summed over heads == +b_O once
    bo2 = b_o.reshape(1, d_model).astype(jnp.float32)
    ln1w2, ln1b2 = ln1_w.reshape(1, d_model).astype(jnp.float32), ln1_b.reshape(1, d_model).astype(jnp.float32)
    ln2w2, ln2b2 = ln2_w.reshape(1, d_model).astype(jnp.float32), ln2_b.reshape(1, d_model).astype(jnp.float32)
    win_bf = w_in.astype(mm_dtype)
    wout_bf = w_out.astype(mm_dtype)
    bin2 = b_in.reshape(1, d_mlp).astype(jnp.float32)
    bout2 = b_out.reshape(1, d_model).astype(jnp.float32)

    # ---- kernel 1: LN1 + attention + residual (grid over batch, parallel) ----
    attn_flops = batch * (2 * seq * d_model * 3 * hdh
                          + 2 * 2 * n_heads * seq * seq * d_head
                          + 2 * seq * hdh * d_model)
    attn_bytes = (2 * batch * seq * d_model * itemsize                 # resid read + write
                  + (d_model * 3 * hdh + hdh * d_model) * 2            # bf16 weights
                  + (3 * hdh + 3 * d_model) * 4)                       # biases / LN params
    attn_vmem = min(max(int(2 * (
        2 * 2 * seq * d_model * itemsize                               # resid in/out, double-buffered
        + (d_model * 3 * hdh + hdh * d_model) * 2 * 2                  # bf16 weights, double-buffered
        + seq * hdh * 2                                                # z scratch (bf16)
        + seq * 3 * hdh * 4 + seq * seq * 4)),                         # live qkv f32 + one score tile
        32 << 20), 64 << 20)

    resid_mid = pl.pallas_call(
        functools.partial(_attn_block_kernel, n_heads=n_heads, d_head=d_head,
                          ln_eps=ln_eps),
        out_shape=jax.ShapeDtypeStruct((batch, seq, d_model), dtype),
        grid_spec=pltpu.PrefetchScalarGridSpec(
            num_scalar_prefetch=0,
            grid=(batch,),
            in_specs=[
                pl.BlockSpec((1, seq, d_model), lambda b: (b, 0, 0)),
                pl.BlockSpec((1, d_model), lambda b: (0, 0)),
                pl.BlockSpec((1, d_model), lambda b: (0, 0)),
                pl.BlockSpec((d_model, 3 * hdh), lambda b: (0, 0)),
                pl.BlockSpec((1, 3 * hdh), lambda b: (0, 0)),
                pl.BlockSpec((hdh, d_model), lambda b: (0, 0)),
                pl.BlockSpec((1, d_model), lambda b: (0, 0)),
            ],
            out_specs=pl.BlockSpec((1, seq, d_model), lambda b: (b, 0, 0)),
            scratch_shapes=[pltpu.VMEM((seq, hdh), jnp.bfloat16)],
        ),
        compiler_params=pltpu.CompilerParams(
            dimension_semantics=("parallel",),
            vmem_limit_bytes=attn_vmem),
        cost_estimate=pl.CostEstimate(flops=attn_flops,
                                      transcendentals=batch * n_heads * seq * seq,
                                      bytes_accessed=attn_bytes),
    )(resid_pre, ln1w2, ln1b2, wqkv, bqkv, wo2, bo2)

    # ---- kernel 2: LN2 + MLP + residual (row tiles parallel, d_mlp reduction) ----
    m = batch * seq
    tm_eff = _pick_row_tile(m, tm)            # divides m exactly -> no pad round trip
    resid_flat = resid_mid.reshape(m, d_model)
    if tm_eff == 0:
        # TODO(synk): handle a ragged last row tile in-kernel (masked store) instead of padding.
        tm_eff = _round_up(min(m, tm), 8)
        m_pad = _round_up(m, tm_eff)
        resid_flat = jnp.pad(resid_flat, ((0, m_pad - m), (0, 0)))
    else:
        m_pad = m
    n_row_tiles = m_pad // tm_eff

    tk_eff = min(tk_mlp, d_mlp)
    if d_mlp % tk_eff != 0:
        tk_eff = d_mlp
    n_k_tiles = d_mlp // tk_eff

    mlp_flops = 2 * 2 * m * d_model * d_mlp
    mlp_bytes = (2 * m * d_model * itemsize                             # resid read + out write
                 + n_row_tiles * (d_model * d_mlp + d_mlp * d_model) * 2  # bf16 weights per row tile
                 + (d_mlp + 3 * d_model) * 4)
    mlp_vmem = min(max(int(2 * (
        2 * 2 * tm_eff * d_model * itemsize                             # resid in/out, double-buffered
        + (d_model * tk_eff + tk_eff * d_model) * 2 * 2                 # bf16 weight blocks, double-buffered
        + tm_eff * d_model * 2 + tm_eff * d_model * 4                   # xn (bf16) + acc (f32) scratch
        + tm_eff * tk_eff * 4)),                                        # live pre/post tile
        32 << 20), 64 << 20)

    out_flat = pl.pallas_call(
        functools.partial(_mlp_block_kernel, ln_eps=ln_eps),
        out_shape=jax.ShapeDtypeStruct((m_pad, d_model), dtype),
        grid_spec=pltpu.PrefetchScalarGridSpec(
            num_scalar_prefetch=0,
            grid=(n_row_tiles, n_k_tiles),
            in_specs=[
                pl.BlockSpec((tm_eff, d_model), lambda i, j: (i, 0)),
                pl.BlockSpec((1, d_model), lambda i, j: (0, 0)),
                pl.BlockSpec((1, d_model), lambda i, j: (0, 0)),
                pl.BlockSpec((d_model, tk_eff), lambda i, j: (0, j)),
                pl.BlockSpec((1, tk_eff), lambda i, j: (0, j)),
                pl.BlockSpec((tk_eff, d_model), lambda i, j: (j, 0)),
                pl.BlockSpec((1, d_model), lambda i, j: (0, 0)),
            ],
            out_specs=pl.BlockSpec((tm_eff, d_model), lambda i, j: (i, 0)),
            scratch_shapes=[pltpu.VMEM((tm_eff, d_model), jnp.bfloat16),
                            pltpu.VMEM((tm_eff, d_model), jnp.float32)],
        ),
        compiler_params=pltpu.CompilerParams(
            dimension_semantics=("parallel", "arbitrary"),
            vmem_limit_bytes=mlp_vmem),
        cost_estimate=pl.CostEstimate(flops=mlp_flops,
                                      transcendentals=m * d_mlp,
                                      bytes_accessed=mlp_bytes),
    )(resid_flat, ln2w2, ln2b2, win_bf, bin2, wout_bf, bout2)

    return out_flat[:m].reshape(batch, seq, d_model)


# --------------------------- plain-JAX reference ---------------------------
def _reference(resid_pre, ln1_w, ln1_b, w_q, b_q, w_k, b_k, w_v, b_v, w_o, b_o,
               ln2_w, ln2_b, w_in, b_in, w_out, b_out, *, d_head, ln_eps):
    hp = jax.lax.Precision.HIGHEST

    def ln(x, w, b):
        mean = jnp.mean(x, -1, keepdims=True)
        xc = x - mean
        scale = jnp.sqrt(jnp.mean(xc * xc, -1, keepdims=True) + ln_eps)
        return xc / scale * w + b

    x = resid_pre
    xn = ln(x, ln1_w, ln1_b)
    q = jnp.einsum('bqd,hde->bqhe', xn, w_q, precision=hp) + b_q
    k = jnp.einsum('bqd,hde->bqhe', xn, w_k, precision=hp) + b_k
    v = jnp.einsum('bqd,hde->bqhe', xn, w_v, precision=hp) + b_v
    scores = jnp.einsum('bqhe,bkhe->bhqk', q, k, precision=hp) / math.sqrt(d_head)
    s = x.shape[1]
    mask = jnp.triu(jnp.ones((s, s), dtype=bool), k=1)
    scores = jnp.where(mask, -jnp.inf, scores)
    pattern = jax.nn.softmax(scores, axis=-1)
    z = jnp.einsum('bhqk,bkhe->bqhe', pattern, v, precision=hp)
    attn_out = jnp.einsum('bqhe,hed->bqd', z, w_o, precision=hp) + b_o
    resid_mid = x + attn_out
    xn2 = ln(resid_mid, ln2_w, ln2_b)
    pre = jnp.einsum('bpd,dm->bpm', xn2, w_in, precision=hp) + b_in
    post = _gelu_new(pre)
    mlp_out = jnp.einsum('bpm,md->bpd', post, w_out, precision=hp) + b_out
    return resid_mid + mlp_out


if __name__ == "__main__":
    # Small shapes consistent with the module's forward.
    batch, seq, d_model = 2, 8, 32
    n_heads, d_head, d_mlp = 4, 8, 128
    init_range, ln_eps = 0.02, 1e-5

    key = jax.random.PRNGKey(0)
    ks = jax.random.split(key, 8)

    resid_pre = jax.random.normal(ks[0], (batch, seq, d_model), dtype=jnp.float32)
    ln1_w = jnp.ones((d_model,), jnp.float32)
    ln1_b = jnp.zeros((d_model,), jnp.float32)
    ln2_w = jnp.ones((d_model,), jnp.float32)
    ln2_b = jnp.zeros((d_model,), jnp.float32)
    w_q = init_range * jax.random.normal(ks[1], (n_heads, d_model, d_head), jnp.float32)
    w_k = init_range * jax.random.normal(ks[2], (n_heads, d_model, d_head), jnp.float32)
    w_v = init_range * jax.random.normal(ks[3], (n_heads, d_model, d_head), jnp.float32)
    w_o = init_range * jax.random.normal(ks[4], (n_heads, d_head, d_model), jnp.float32)
    b_q = jnp.zeros((n_heads, d_head), jnp.float32)
    b_k = jnp.zeros((n_heads, d_head), jnp.float32)
    b_v = jnp.zeros((n_heads, d_head), jnp.float32)
    b_o = jnp.zeros((d_model,), jnp.float32)
    w_in = init_range * jax.random.normal(ks[5], (d_model, d_mlp), jnp.float32)
    b_in = jnp.zeros((d_mlp,), jnp.float32)
    w_out = init_range * jax.random.normal(ks[6], (d_mlp, d_model), jnp.float32)
    b_out = jnp.zeros((d_model,), jnp.float32)

    out = transformer_block(resid_pre,
                            ln1_w, ln1_b,
                            w_q, b_q, w_k, b_k, w_v, b_v, w_o, b_o,
                            ln2_w, ln2_b,
                            w_in, b_in, w_out, b_out,
                            n_heads=n_heads, d_head=d_head, ln_eps=ln_eps)
    jax.block_until_ready(out)

    ref = _reference(resid_pre, ln1_w, ln1_b, w_q, b_q, w_k, b_k, w_v, b_v, w_o, b_o,
                     ln2_w, ln2_b, w_in, b_in, w_out, b_out,
                     d_head=d_head, ln_eps=ln_eps)

    assert out.shape == (batch, seq, d_model)
    assert jnp.all(jnp.isfinite(out))
    # bf16 MXU operands (f32 accumulation) vs HIGHEST-precision f32 reference.
    assert jnp.allclose(out, ref, atol=1e-2, rtol=1e-2), \
        float(jnp.max(jnp.abs(out - ref)))

    print("KERNEL_OK")
</pallas_src>

<mosaic_0001>
module attributes {stable_mosaic.version = 11 : i64} {
  func.func @_mlp_block_kernel(%arg0: i32, %arg1: i32, %arg2: memref<16x32xf32, #tpu.memory_space<vmem>>, %arg3: memref<1x32xf32, #tpu.memory_space<vmem>>, %arg4: memref<1x32xf32, #tpu.memory_space<vmem>>, %arg5: memref<32x128xbf16, #tpu.memory_space<vmem>>, %arg6: memref<1x128xf32, #tpu.memory_space<vmem>>, %arg7: memref<128x32xbf16, #tpu.memory_space<vmem>>, %arg8: memref<1x32xf32, #tpu.memory_space<vmem>>, %arg9: memref<16x32xf32, #tpu.memory_space<vmem>>, %arg10: memref<16x32xbf16, #tpu.memory_space<vmem>>, %arg11: memref<16x32xf32, #tpu.memory_space<vmem>>) attributes {dimension_semantics = [#tpu.dimension_semantics<parallel>, #tpu.dimension_semantics<arbitrary>], iteration_bounds = array<i64: 1, 1>, scalar_prefetch = 0 : i64, scratch_operands = 2 : i64, tpu.core_type = #tpu.core_type<tc>, window_params = [{transform_indices = @transform_0, window_bounds = array<i64: 16, 32>}, {pipeline_mode = #tpu.pipeline_mode<synchronous>, transform_indices = @transform_1, window_bounds = array<i64: 1, 32>}, {pipeline_mode = #tpu.pipeline_mode<synchronous>, transform_indices = @transform_2, window_bounds = array<i64: 1, 32>}, {transform_indices = @transform_3, window_bounds = array<i64: 32, 128>}, {transform_indices = @transform_4, window_bounds = array<i64: 1, 128>}, {transform_indices = @transform_5, window_bounds = array<i64: 128, 32>}, {pipeline_mode = #tpu.pipeline_mode<synchronous>, transform_indices = @transform_6, window_bounds = array<i64: 1, 32>}, {transform_indices = @transform_7, window_bounds = array<i64: 16, 32>}]} {
    %c0_i32 = arith.constant 0 : i32
    %0 = arith.cmpi eq, %arg1, %c0_i32 : i32
    %1 = arith.extui %0 : i1 to i32
    %c0_i32_0 = arith.constant 0 : i32
    %2 = arith.cmpi ne, %1, %c0_i32_0 : i32
    scf.if %2 {
      %c0_19 = arith.constant 0 : index
      %c0_20 = arith.constant 0 : index
      %31 = vector.load %arg2[%c0_19, %c0_20] : memref<16x32xf32, #tpu.memory_space<vmem>>, vector<16x32xf32>
      %cst_21 = arith.constant dense<0.000000e+00> : vector<16xf32>
      %32 = vector.multi_reduction <add>, %31, %cst_21 [1] : vector<16x32xf32> to vector<16xf32>
      %33 = vector.shape_cast %32 : vector<16xf32> to vector<16x1xf32>
      %cst_22 = arith.constant 3.200000e+01 : f32
      %34 = vector.broadcast %cst_22 : f32 to vector<16x1xf32>
      %35 = arith.divf %33, %34 : vector<16x1xf32>
      %36 = vector.broadcast %35 : vector<16x1xf32> to vector<16x32xf32>
      %37 = arith.subf %31, %36 : vector<16x32xf32>
      %38 = arith.mulf %37, %37 : vector<16x32xf32>
      %cst_23 = arith.constant dense<0.000000e+00> : vector<16xf32>
      %39 = vector.multi_reduction <add>, %38, %cst_23 [1] : vector<16x32xf32> to vector<16xf32>
      %40 = vector.shape_cast %39 : vector<16xf32> to vector<16x1xf32>
      %cst_24 = arith.constant 3.200000e+01 : f32
      %41 = vector.broadcast %cst_24 : f32 to vector<16x1xf32>
      %42 = arith.divf %40, %41 : vector<16x1xf32>
      %cst_25 = arith.constant 9.99999974E-6 : f32
      %43 = vector.broadcast %cst_25 : f32 to vector<16x1xf32>
      %44 = arith.addf %42, %43 : vector<16x1xf32>
      %45 = math.sqrt %44 : vector<16x1xf32>
      %46 = vector.broadcast %45 : vector<16x1xf32> to vector<16x32xf32>
      %47 = arith.divf %37, %46 : vector<16x32xf32>
      %c0_26 = arith.constant 0 : index
      %c0_27 = arith.constant 0 : index
      %48 = vector.load %arg3[%c0_26, %c0_27] : memref<1x32xf32, #tpu.memory_space<vmem>>, vector<1x32xf32>
      %49 = vector.broadcast %48 : vector<1x32xf32> to vector<16x32xf32>
      %50 = arith.mulf %47, %49 : vector<16x32xf32>
      %c0_28 = arith.constant 0 : index
      %c0_29 = arith.constant 0 : index
      %51 = vector.load %arg4[%c0_28, %c0_29] : memref<1x32xf32, #tpu.memory_space<vmem>>, vector<1x32xf32>
      %52 = vector.broadcast %51 : vector<1x32xf32> to vector<16x32xf32>
      %53 = arith.addf %50, %52 : vector<16x32xf32>
      %54 = arith.truncf %53 : vector<16x32xf32> to vector<16x32xbf16>
      %c0_30 = arith.constant 0 : index
      %c0_31 = arith.constant 0 : index
      %55 = vector.load %arg10[%c0_30, %c0_31] : memref<16x32xbf16, #tpu.memory_space<vmem>>, vector<16x32xbf16>
      tpu.vector_store %arg10[%c0_30, %c0_31], %54 {strides = array<i32>} : memref<16x32xbf16, #tpu.memory_space<vmem>>, vector<16x32xbf16>,
      %cst_32 = arith.constant 0.000000e+00 : f32
      %56 = vector.broadcast %cst_32 : f32 to vector<16x32xf32>
      %c0_33 = arith.constant 0 : index
      %c0_34 = arith.constant 0 : index
      %57 = vector.load %arg11[%c0_33, %c0_34] : memref<16x32xf32, #tpu.memory_space<vmem>>, vector<16x32xf32>
      tpu.vector_store %arg11[%c0_33, %c0_34], %56 {strides = array<i32>} : memref<16x32xf32, #tpu.memory_space<vmem>>, vector<16x32xf32>,
    } else {
    }
    %c0 = arith.constant 0 : index
    %c0_1 = arith.constant 0 : index
    %3 = vector.load %arg10[%c0, %c0_1] : memref<16x32xbf16, #tpu.memory_space<vmem>>, vector<16x32xbf16>
    %c0_2 = arith.constant 0 : index
    %c0_3 = arith.constant 0 : index
    %4 = vector.load %arg5[%c0_2, %c0_3] : memref<32x128xbf16, #tpu.memory_space<vmem>>, vector<32x128xbf16>
    %cst = arith.constant dense<0.000000e+00> : vector<16x128xf32>
    %5 = tpu.matmul %3, %4, %cst {dimension_numbers = #tpu.dot_dimension_numbers<[1], [0], [0], [1], [0, 0, 1, 1], [], []>} : vector<16x32xbf16>, vector<32x128xbf16>, vector<16x128xf32> -> vector<16x128xf32>
    %c0_4 = arith.constant 0 : index
    %c0_5 = arith.constant 0 : index
    %6 = vector.load %arg6[%c0_4, %c0_5] : memref<1x128xf32, #tpu.memory_space<vmem>>, vector<1x128xf32>
    %7 = vector.broadcast %6 : vector<1x128xf32> to vector<16x128xf32>
    %8 = arith.addf %5, %7 : vector<16x128xf32>
    %cst_6 = arith.constant 5.000000e-01 : f32
    %9 = vector.broadcast %cst_6 : f32 to vector<16x128xf32>
    %10 = arith.mulf %9, %8 : vector<16x128xf32>
    %cst_7 = arith.constant 4.471500e-02 : f32
    %11 = vector.broadcast %cst_7 : f32 to vector<16x128xf32>
    %12 = arith.mulf %11, %8 : vector<16x128xf32>
    %13 = arith.mulf %12, %8 : vector<16x128xf32>
    %14 = arith.mulf %13, %8 : vector<16x128xf32>
    %15 = arith.addf %8, %14 : vector<16x128xf32>
    %cst_8 = arith.constant 0.797884583 : f32
    %16 = vector.broadcast %cst_8 : f32 to vector<16x128xf32>
    %17 = arith.mulf %16, %15 : vector<16x128xf32>
    %18 = math.tanh %17 : vector<16x128xf32>
    %cst_9 = arith.constant 1.000000e+00 : f32
    %19 = vector.broadcast %cst_9 : f32 to vector<16x128xf32>
    %20 = arith.addf %19, %18 : vector<16x128xf32>
    %21 = arith.mulf %10, %20 : vector<16x128xf32>
    %c0_10 = arith.constant 0 : index
    %c0_11 = arith.constant 0 : index
    %22 = vector.load %arg11[%c0_10, %c0_11] : memref<16x32xf32, #tpu.memory_space<vmem>>, vector<16x32xf32>
    %23 = arith.truncf %21 : vector<16x128xf32> to vector<16x128xbf16>
    %c0_12 = arith.constant 0 : index
    %c0_13 = arith.constant 0 : index
    %24 = vector.load %arg7[%c0_12, %c0_13] : memref<128x32xbf16, #tpu.memory_space<vmem>>, vector<128x32xbf16>
    %cst_14 = arith.constant dense<0.000000e+00> : vector<16x32xf32>
    %25 = tpu.matmul %23, %24, %cst_14 {dimension_numbers = #tpu.dot_dimension_numbers<[1], [0], [0], [1], [0, 0, 1, 1], [], []>} : vector<16x128xbf16>, vector<128x32xbf16>, vector<16x32xf32> -> vector<16x32xf32>
    %26 = arith.addf %22, %25 : vector<16x32xf32>
    %c0_15 = arith.constant 0 : index
    %c0_16 = arith.constant 0 : index
    %27 = vector.load %arg11[%c0_15, %c0_16] : memref<16x32xf32, #tpu.memory_space<vmem>>, vector<16x32xf32>
    tpu.vector_store %arg11[%c0_15, %c0_16], %26 {strides = array<i32>} : memref<16x32xf32, #tpu.memory_space<vmem>>, vector<16x32xf32>,
    %c0_i32_17 = arith.constant 0 : i32
    %28 = arith.cmpi eq, %arg1, %c0_i32_17 : i32
    %29 = arith.extui %28 : i1 to i32
    %c0_i32_18 = arith.constant 0 : i32
    %30 = arith.cmpi ne, %29, %c0_i32_18 : i32
    scf.if %30 {
      %c0_19 = arith.constant 0 : index
      %c0_20 = arith.constant 0 : index
      %31 = vector.load %arg2[%c0_19, %c0_20] : memref<16x32xf32, #tpu.memory_space<vmem>>, vector<16x32xf32>
      %c0_21 = arith.constant 0 : index
      %c0_22 = arith.constant 0 : index
      %32 = vector.load %arg11[%c0_21, %c0_22] : memref<16x32xf32, #tpu.memory_space<vmem>>, vector<16x32xf32>
      %33 = arith.addf %31, %32 : vector<16x32xf32>
      %c0_23 = arith.constant 0 : index
      %c0_24 = arith.constant 0 : index
      %34 = vector.load %arg8[%c0_23, %c0_24] : memref<1x32xf32, #tpu.memory_space<vmem>>, vector<1x32xf32>
      %35 = vector.broadcast %34 : vector<1x32xf32> to vector<16x32xf32>
      %36 = arith.addf %33, %35 : vector<16x32xf32>
      %c0_25 = arith.constant 0 : index
      %c0_26 = arith.constant 0 : index
      %37 = vector.load %arg9[%c0_25, %c0_26] : memref<16x32xf32, #tpu.memory_space<vmem>>, vector<16x32xf32>
      tpu.vector_store %arg9[%c0_25, %c0_26], %36 {strides = array<i32>} : memref<16x32xf32, #tpu.memory_space<vmem>>, vector<16x32xf32>,
    } else {
    }
    return
  }
  func.func @transform_0(%arg0: i32, %arg1: i32) -> (i32, i32) {
    %c0_i32 = arith.constant 0 : i32
    %c0_i32_0 = arith.constant 0 : i32
    return %arg0, %c0_i32 : i32, i32
  }
  func.func @transform_1(%arg0: i32, %arg1: i32) -> (i32, i32) {
    %c0_i32 = arith.constant 0 : i32
    %c0_i32_0 = arith.constant 0 : i32
    %c0_i32_1 = arith.constant 0 : i32
    return %c0_i32, %c0_i32_0 : i32, i32
  }
  func.func @transform_2(%arg0: i32, %arg1: i32) -> (i32, i32) {
    %c0_i32 = arith.constant 0 : i32
    %c0_i32_0 = arith.constant 0 : i32
    %c0_i32_1 = arith.constant 0 : i32
    return %c0_i32, %c0_i32_0 : i32, i32
  }
  func.func @transform_3(%arg0: i32, %arg1: i32) -> (i32, i32) {
    %c0_i32 = arith.constant 0 : i32
    %c0_i32_0 = arith.constant 0 : i32
    return %c0_i32, %arg1 : i32, i32
  }
  func.func @transform_4(%arg0: i32, %arg1: i32) -> (i32, i32) {
    %c0_i32 = arith.constant 0 : i32
    %c0_i32_0 = arith.constant 0 : i32
    return %c0_i32, %arg1 : i32, i32
  }
  func.func @transform_5(%arg0: i32, %arg1: i32) -> (i32, i32) {
    %c0_i32 = arith.constant 0 : i32
    %c0_i32_0 = arith.constant 0 : i32
    return %arg1, %c0_i32 : i32, i32
  }
  func.func @transform_6(%arg0: i32, %arg1: i32) -> (i32, i32) {
    %c0_i32 = arith.constant 0 : i32
    %c0_i32_0 = arith.constant 0 : i32
    %c0_i32_1 = arith.constant 0 : i32
    return %c0_i32, %c0_i32_0 : i32, i32
  }
  func.func @transform_7(%arg0: i32, %arg1: i32) -> (i32, i32) {
    %c0_i32 = arith.constant 0 : i32
    %c0_i32_0 = arith.constant 0 : i32
    return %arg0, %c0_i32 : i32, i32
  }
}

module attributes {stable_mosaic.version = 11 : i64} {
  func.func @_attn_block_kernel(%arg0: i32, %arg1: memref<1x8x32xf32, #tpu.memory_space<vmem>>, %arg2: memref<1x32xf32, #tpu.memory_space<vmem>>, %arg3: memref<1x32xf32, #tpu.memory_space<vmem>>, %arg4: memref<32x96xbf16, #tpu.memory_space<vmem>>, %arg5: memref<1x96xf32, #tpu.memory_space<vmem>>, %arg6: memref<32x32xbf16, #tpu.memory_space<vmem>>, %arg7: memref<1x32xf32, #tpu.memory_space<vmem>>, %arg8: memref<1x8x32xf32, #tpu.memory_space<vmem>>, %arg9: memref<8x32xbf16, #tpu.memory_space<vmem>>) attributes {dimension_semantics = [#tpu.dimension_semantics<parallel>], iteration_bounds = array<i64: 2>, scalar_prefetch = 0 : i64, scratch_operands = 1 : i64, tpu.core_type = #tpu.core_type<tc>, window_params = [{transform_indices = @transform_0, window_bounds = array<i64: 1, 8, 32>}, {pipeline_mode = #tpu.pipeline_mode<synchronous>, transform_indices = @transform_1, window_bounds = array<i64: 1, 32>}, {pipeline_mode = #tpu.pipeline_mode<synchronous>, transform_indices = @transform_2, window_bounds = array<i64: 1, 32>}, {pipeline_mode = #tpu.pipeline_mode<synchronous>, transform_indices = @transform_3, window_bounds = array<i64: 32, 96>}, {pipeline_mode = #tpu.pipeline_mode<synchronous>, transform_indices = @transform_4, window_bounds = array<i64: 1, 96>}, {pipeline_mode = #tpu.pipeline_mode<synchronous>, transform_indices = @transform_5, window_bounds = array<i64: 32, 32>}, {pipeline_mode = #tpu.pipeline_mode<synchronous>, transform_indices = @transform_6, window_bounds = array<i64: 1, 32>}, {transform_indices = @transform_7, window_bounds = array<i64: 1, 8, 32>}]} {
    %c0 = arith.constant 0 : index
    %c0_0 = arith.constant 0 : index
    %c0_1 = arith.constant 0 : index
    %0 = vector.load %arg1[%c0, %c0_0, %c0_1] : memref<1x8x32xf32, #tpu.memory_space<vmem>>, vector<1x8x32xf32>
    %1 = vector.shape_cast %0 : vector<1x8x32xf32> to vector<8x32xf32>
    %cst = arith.constant dense<0.000000e+00> : vector<8xf32>
    %2 = vector.multi_reduction <add>, %1, %cst [1] : vector<8x32xf32> to vector<8xf32>
    %3 = vector.shape_cast %2 : vector<8xf32> to vector<8x1xf32>
    %cst_2 = arith.constant 3.200000e+01 : f32
    %4 = vector.broadcast %cst_2 : f32 to vector<8x1xf32>
    %5 = arith.divf %3, %4 : vector<8x1xf32>
    %6 = vector.broadcast %5 : vector<8x1xf32> to vector<8x32xf32>
    %7 = arith.subf %1, %6 : vector<8x32xf32>
    %8 = arith.mulf %7, %7 : vector<8x32xf32>
    %cst_3 = arith.constant dense<0.000000e+00> : vector<8xf32>
    %9 = vector.multi_reduction <add>, %8, %cst_3 [1] : vector<8x32xf32> to vector<8xf32>
    %10 = vector.shape_cast %9 : vector<8xf32> to vector<8x1xf32>
    %cst_4 = arith.constant 3.200000e+01 : f32
    %11 = vector.broadcast %cst_4 : f32 to vector<8x1xf32>
    %12 = arith.divf %10, %11 : vector<8x1xf32>
    %cst_5 = arith.constant 9.99999974E-6 : f32
    %13 = vector.broadcast %cst_5 : f32 to vector<8x1xf32>
    %14 = arith.addf %12, %13 : vector<8x1xf32>
    %15 = math.sqrt %14 : vector<8x1xf32>
    %16 = vector.broadcast %15 : vector<8x1xf32> to vector<8x32xf32>
    %17 = arith.divf %7, %16 : vector<8x32xf32>
    %c0_6 = arith.constant 0 : index
    %c0_7 = arith.constant 0 : index
    %18 = vector.load %arg2[%c0_6, %c0_7] : memref<1x32xf32, #tpu.memory_space<vmem>>, vector<1x32xf32>
    %19 = vector.broadcast %18 : vector<1x32xf32> to vector<8x32xf32>
    %20 = arith.mulf %17, %19 : vector<8x32xf32>
    %c0_8 = arith.constant 0 : index
    %c0_9 = arith.constant 0 : index
    %21 = vector.load %arg3[%c0_8, %c0_9] : memref<1x32xf32, #tpu.memory_space<vmem>>, vector<1x32xf32>
    %22 = vector.broadcast %21 : vector<1x32xf32> to vector<8x32xf32>
    %23 = arith.addf %20, %22 : vector<8x32xf32>
    %24 = arith.truncf %23 : vector<8x32xf32> to vector<8x32xbf16>
    %c0_10 = arith.constant 0 : index
    %c0_11 = arith.constant 0 : index
    %25 = vector.load %arg4[%c0_10, %c0_11] : memref<32x96xbf16, #tpu.memory_space<vmem>>, vector<32x96xbf16>
    %cst_12 = arith.constant dense<0.000000e+00> : vector<8x96xf32>
    %26 = tpu.matmul %24, %25, %cst_12 {dimension_numbers = #tpu.dot_dimension_numbers<[1], [0], [0], [1], [0, 0, 1, 1], [], []>} : vector<8x32xbf16>, vector<32x96xbf16>, vector<8x96xf32> -> vector<8x96xf32>
    %c0_13 = arith.constant 0 : index
    %c0_14 = arith.constant 0 : index
    %27 = vector.load %arg5[%c0_13, %c0_14] : memref<1x96xf32, #tpu.memory_space<vmem>>, vector<1x96xf32>
    %28 = vector.broadcast %27 : vector<1x96xf32> to vector<8x96xf32>
    %29 = arith.addf %26, %28 : vector<8x96xf32>
    %30 = arith.truncf %29 : vector<8x96xf32> to vector<8x96xbf16>
    %31 = tpu.iota {dimensions = array<i32: 0>} : vector<8x8xi32>
    %32 = tpu.iota {dimensions = array<i32: 1>} : vector<8x8xi32>
    %33 = arith.cmpi sgt, %32, %31 : vector<8x8xi32>
    %34 = vector.extract_strided_slice %30 {offsets = [0, 0], sizes = [8, 8], strides = [1, 1]} : vector<8x96xbf16> to vector<8x8xbf16>
    %35 = vector.extract_strided_slice %30 {offsets = [0, 32], sizes = [8, 8], strides = [1, 1]} : vector<8x96xbf16> to vector<8x8xbf16>
    %36 = vector.extract_strided_slice %30 {offsets = [0, 64], sizes = [8, 8], strides = [1, 1]} : vector<8x96xbf16> to vector<8x8xbf16>
    "tpu.trace_start"() <{level = 10 : i32, message = "qe,ke->qk"}> : () -> ()
    %cst_15 = arith.constant dense<0.000000e+00> : vector<8x8xf32>
    %37 = tpu.matmul %34, %35, %cst_15 {dimension_numbers = #tpu.dot_dimension_numbers<[1], [1], [0], [0], [0, 0, 1, 0], [], []>} : vector<8x8xbf16>, vector<8x8xbf16>, vector<8x8xf32> -> vector<8x8xf32>
    "tpu.trace_stop"() : () -> ()
    %cst_16 = arith.constant 0.353553385 : f32
    %38 = vector.broadcast %cst_16 : f32 to vector<8x8xf32>
    %39 = arith.mulf %37, %38 : vector<8x8xf32>
    %cst_17 = arith.constant 0xFF800000 : f32
    %40 = vector.broadcast %cst_17 : f32 to vector<8x8xf32>
    %41 = arith.select %33, %40, %39 : vector<8x8xi1>, vector<8x8xf32>
    %cst_18 = arith.constant dense<0xFF800000> : vector<8xf32>
    %42 = vector.multi_reduction <maximumf>, %41, %cst_18 [1] : vector<8x8xf32> to vector<8xf32>
    %43 = vector.shape_cast %42 : vector<8xf32> to vector<8x1xf32>
    %44 = vector.broadcast %43 : vector<8x1xf32> to vector<8x8xf32>
    %45 = arith.subf %41, %44 : vector<8x8xf32>
    %46 = math.exp %45 : vector<8x8xf32>
    %cst_19 = arith.constant dense<0.000000e+00> : vector<8xf32>
    %47 = vector.multi_reduction <add>, %46, %cst_19 [1] : vector<8x8xf32> to vector<8xf32>
    %48 = vector.shape_cast %47 : vector<8xf32> to vector<8x1xf32>
    %49 = tpu.reciprocal %48 {approx = true} : vector<8x1xf32> -> vector<8x1xf32>
    %50 = vector.broadcast %49 : vector<8x1xf32> to vector<8x8xf32>
    %51 = arith.mulf %46, %50 : vector<8x8xf32>
    %52 = arith.truncf %51 : vector<8x8xf32> to vector<8x8xbf16>
    %cst_20 = arith.constant dense<0.000000e+00> : vector<8x8xf32>
    %53 = tpu.matmul %52, %36, %cst_20 {dimension_numbers = #tpu.dot_dimension_numbers<[1], [0], [0], [1], [0, 0, 1, 1], [], []>} : vector<8x8xbf16>, vector<8x8xbf16>, vector<8x8xf32> -> vector<8x8xf32>
    %54 = arith.truncf %53 : vector<8x8xf32> to vector<8x8xbf16>
    %c0_21 = arith.constant 0 : index
    %c0_22 = arith.constant 0 : index
    %55 = vector.load %arg9[%c0_21, %c0_22] : memref<8x32xbf16, #tpu.memory_space<vmem>>, vector<8x8xbf16>
    tpu.vector_store %arg9[%c0_21, %c0_22], %54 {strides = array<i32>} : memref<8x32xbf16, #tpu.memory_space<vmem>>, vector<8x8xbf16>,
    %56 = vector.extract_strided_slice %30 {offsets = [0, 8], sizes = [8, 8], strides = [1, 1]} : vector<8x96xbf16> to vector<8x8xbf16>
    %57 = vector.extract_strided_slice %30 {offsets = [0, 40], sizes = [8, 8], strides = [1, 1]} : vector<8x96xbf16> to vector<8x8xbf16>
    %58 = vector.extract_strided_slice %30 {offsets = [0, 72], sizes = [8, 8], strides = [1, 1]} : vector<8x96xbf16> to vector<8x8xbf16>
    "tpu.trace_start"() <{level = 10 : i32, message = "qe,ke->qk"}> : () -> ()
    %cst_23 = arith.constant dense<0.000000e+00> : vector<8x8xf32>
    %59 = tpu.matmul %56, %57, %cst_23 {dimension_numbers = #tpu.dot_dimension_numbers<[1], [1], [0], [0], [0, 0, 1, 0], [], []>} : vector<8x8xbf16>, vector<8x8xbf16>, vector<8x8xf32> -> vector<8x8xf32>
    "tpu.trace_stop"() : () -> ()
    %cst_24 = arith.constant 0.353553385 : f32
    %60 = vector.broadcast %cst_24 : f32 to vector<8x8xf32>
    %61 = arith.mulf %59, %60 : vector<8x8xf32>
    %cst_25 = arith.constant 0xFF800000 : f32
    %62 = vector.broadcast %cst_25 : f32 to vector<8x8xf32>
    %63 = arith.select %33, %62, %61 : vector<8x8xi1>, vector<8x8xf32>
    %cst_26 = arith.constant dense<0xFF800000> : vector<8xf32>
    %64 = vector.multi_reduction <maximumf>, %63, %cst_26 [1] : vector<8x8xf32> to vector<8xf32>
    %65 = vector.shape_cast %64 : vector<8xf32> to vector<8x1xf32>
    %66 = vector.broadcast %65 : vector<8x1xf32> to vector<8x8xf32>
    %67 = arith.subf %63, %66 : vector<8x8xf32>
    %68 = math.exp %67 : vector<8x8xf32>
    %cst_27 = arith.constant dense<0.000000e+00> : vector<8xf32>
    %69 = vector.multi_reduction <add>, %68, %cst_27 [1] : vector<8x8xf32> to vector<8xf32>
    %70 = vector.shape_cast %69 : vector<8xf32> to vector<8x1xf32>
    %71 = tpu.reciprocal %70 {approx = true} : vector<8x1xf32> -> vector<8x1xf32>
    %72 = vector.broadcast %71 : vector<8x1xf32> to vector<8x8xf32>
    %73 = arith.mulf %68, %72 : vector<8x8xf32>
    %74 = arith.truncf %73 : vector<8x8xf32> to vector<8x8xbf16>
    %cst_28 = arith.constant dense<0.000000e+00> : vector<8x8xf32>
    %75 = tpu.matmul %74, %58, %cst_28 {dimension_numbers = #tpu.dot_dimension_numbers<[1], [0], [0], [1], [0, 0, 1, 1], [], []>} : vector<8x8xbf16>, vector<8x8xbf16>, vector<8x8xf32> -> vector<8x8xf32>
    %76 = arith.truncf %75 : vector<8x8xf32> to vector<8x8xbf16>
    %c0_29 = arith.constant 0 : index
    %c8 = arith.constant 8 : index
    %77 = vector.load %arg9[%c0_29, %c8] : memref<8x32xbf16, #tpu.memory_space<vmem>>, vector<8x8xbf16>
    tpu.vector_store %arg9[%c0_29, %c8], %76 {strides = array<i32>} : memref<8x32xbf16, #tpu.memory_space<vmem>>, vector<8x8xbf16>,
    %78 = vector.extract_strided_slice %30 {offsets = [0, 16], sizes = [8, 8], strides = [1, 1]} : vector<8x96xbf16> to vector<8x8xbf16>
    %79 = vector.extract_strided_slice %30 {offsets = [0, 48], sizes = [8, 8], strides = [1, 1]} : vector<8x96xbf16> to vector<8x8xbf16>
    %80 = vector.extract_strided_slice %30 {offsets = [0, 80], sizes = [8, 8], strides = [1, 1]} : vector<8x96xbf16> to vector<8x8xbf16>
    "tpu.trace_start"() <{level = 10 : i32, message = "qe,ke->qk"}> : () -> ()
    %cst_30 = arith.constant dense<0.000000e+00> : vector<8x8xf32>
    %81 = tpu.matmul %78, %79, %cst_30 {dimension_numbers = #tpu.dot_dimension_numbers<[1], [1], [0], [0], [0, 0, 1, 0], [], []>} : vector<8x8xbf16>, vector<8x8xbf16>, vector<8x8xf32> -> vector<8x8xf32>
    "tpu.trace_stop"() : () -> ()
    %cst_31 = arith.constant 0.353553385 : f32
    %82 = vector.broadcast %cst_31 : f32 to vector<8x8xf32>
    %83 = arith.mulf %81, %82 : vector<8x8xf32>
    %cst_32 = arith.constant 0xFF800000 : f32
    %84 = vector.broadcast %cst_32 : f32 to vector<8x8xf32>
    %85 = arith.select %33, %84, %83 : vector<8x8xi1>, vector<8x8xf32>
    %cst_33 = arith.constant dense<0xFF800000> : vector<8xf32>
    %86 = vector.multi_reduction <maximumf>, %85, %cst_33 [1] : vector<8x8xf32> to vector<8xf32>
    %87 = vector.shape_cast %86 : vector<8xf32> to vector<8x1xf32>
    %88 = vector.broadcast %87 : vector<8x1xf32> to vector<8x8xf32>
    %89 = arith.subf %85, %88 : vector<8x8xf32>
    %90 = math.exp %89 : vector<8x8xf32>
    %cst_34 = arith.constant dense<0.000000e+00> : vector<8xf32>
    %91 = vector.multi_reduction <add>, %90, %cst_34 [1] : vector<8x8xf32> to vector<8xf32>
    %92 = vector.shape_cast %91 : vector<8xf32> to vector<8x1xf32>
    %93 = tpu.reciprocal %92 {approx = true} : vector<8x1xf32> -> vector<8x1xf32>
    %94 = vector.broadcast %93 : vector<8x1xf32> to vector<8x8xf32>
    %95 = arith.mulf %90, %94 : vector<8x8xf32>
    %96 = arith.truncf %95 : vector<8x8xf32> to vector<8x8xbf16>
    %cst_35 = arith.constant dense<0.000000e+00> : vector<8x8xf32>
    %97 = tpu.matmul %96, %80, %cst_35 {dimension_numbers = #tpu.dot_dimension_numbers<[1], [0], [0], [1], [0, 0, 1, 1], [], []>} : vector<8x8xbf16>, vector<8x8xbf16>, vector<8x8xf32> -> vector<8x8xf32>
    %98 = arith.truncf %97 : vector<8x8xf32> to vector<8x8xbf16>
    %c0_36 = arith.constant 0 : index
    %c16 = arith.constant 16 : index
    %99 = vector.load %arg9[%c0_36, %c16] : memref<8x32xbf16, #tpu.memory_space<vmem>>, vector<8x8xbf16>
    tpu.vector_store %arg9[%c0_36, %c16], %98 {strides = array<i32>} : memref<8x32xbf16, #tpu.memory_space<vmem>>, vector<8x8xbf16>,
    %100 = vector.extract_strided_slice %30 {offsets = [0, 24], sizes = [8, 8], strides = [1, 1]} : vector<8x96xbf16> to vector<8x8xbf16>
    %101 = vector.extract_strided_slice %30 {offsets = [0, 56], sizes = [8, 8], strides = [1, 1]} : vector<8x96xbf16> to vector<8x8xbf16>
    %102 = vector.extract_strided_slice %30 {offsets = [0, 88], sizes = [8, 8], strides = [1, 1]} : vector<8x96xbf16> to vector<8x8xbf16>
    "tpu.trace_start"() <{level = 10 : i32, message = "qe,ke->qk"}> : () -> ()
    %cst_37 = arith.constant dense<0.000000e+00> : vector<8x8xf32>
    %103 = tpu.matmul %100, %101, %cst_37 {dimension_numbers = #tpu.dot_dimension_numbers<[1], [1], [0], [0], [0, 0, 1, 0], [], []>} : vector<8x8xbf16>, vector<8x8xbf16>, vector<8x8xf32> -> vector<8x8xf32>
    "tpu.trace_stop"() : () -> ()
    %cst_38 = arith.constant 0.353553385 : f32
    %104 = vector.broadcast %cst_38 : f32 to vector<8x8xf32>
    %105 = arith.mulf %103, %104 : vector<8x8xf32>
    %cst_39 = arith.constant 0xFF800000 : f32
    %106 = vector.broadcast %cst_39 : f32 to vector<8x8xf32>
    %107 = arith.select %33, %106, %105 : vector<8x8xi1>, vector<8x8xf32>
    %cst_40 = arith.constant dense<0xFF800000> : vector<8xf32>
    %108 = vector.multi_reduction <maximumf>, %107, %cst_40 [1] : vector<8x8xf32> to vector<8xf32>
    %109 = vector.shape_cast %108 : vector<8xf32> to vector<8x1xf32>
    %110 = vector.broadcast %109 : vector<8x1xf32> to vector<8x8xf32>
    %111 = arith.subf %107, %110 : vector<8x8xf32>
    %112 = math.exp %111 : vector<8x8xf32>
    %cst_41 = arith.constant dense<0.000000e+00> : vector<8xf32>
    %113 = vector.multi_reduction <add>, %112, %cst_41 [1] : vector<8x8xf32> to vector<8xf32>
    %114 = vector.shape_cast %113 : vector<8xf32> to vector<8x1xf32>
    %115 = tpu.reciprocal %114 {approx = true} : vector<8x1xf32> -> vector<8x1xf32>
    %116 = vector.broadcast %115 : vector<8x1xf32> to vector<8x8xf32>
    %117 = arith.mulf %112, %116 : vector<8x8xf32>
    %118 = arith.truncf %117 : vector<8x8xf32> to vector<8x8xbf16>
    %cst_42 = arith.constant dense<0.000000e+00> : vector<8x8xf32>
    %119 = tpu.matmul %118, %102, %cst_42 {dimension_numbers = #tpu.dot_dimension_numbers<[1], [0], [0], [1], [0, 0, 1, 1], [], []>} : vector<8x8xbf16>, vector<8x8xbf16>, vector<8x8xf32> -> vector<8x8xf32>
    %120 = arith.truncf %119 : vector<8x8xf32> to vector<8x8xbf16>
    %c0_43 = arith.constant 0 : index
    %c24 = arith.constant 24 : index
    %121 = vector.load %arg9[%c0_43, %c24] : memref<8x32xbf16, #tpu.memory_space<vmem>>, vector<8x8xbf16>
    tpu.vector_store %arg9[%c0_43, %c24], %120 {strides = array<i32>} : memref<8x32xbf16, #tpu.memory_space<vmem>>, vector<8x8xbf16>,
    %c0_44 = arith.constant 0 : index
    %c0_45 = arith.constant 0 : index
    %122 = vector.load %arg9[%c0_44, %c0_45] : memref<8x32xbf16, #tpu.memory_space<vmem>>, vector<8x32xbf16>
    %c0_46 = arith.constant 0 : index
    %c0_47 = arith.constant 0 : index
    %123 = vector.load %arg6[%c0_46, %c0_47] : memref<32x32xbf16, #tpu.memory_space<vmem>>, vector<32x32xbf16>
    %cst_48 = arith.constant dense<0.000000e+00> : vector<8x32xf32>
    %124 = tpu.matmul %122, %123, %cst_48 {dimension_numbers = #tpu.dot_dimension_numbers<[1], [0], [0], [1], [0, 0, 1, 1], [], []>} : vector<8x32xbf16>, vector<32x32xbf16>, vector<8x32xf32> -> vector<8x32xf32>
    %c0_49 = arith.constant 0 : index
    %c0_50 = arith.constant 0 : index
    %125 = vector.load %arg7[%c0_49, %c0_50] : memref<1x32xf32, #tpu.memory_space<vmem>>, vector<1x32xf32>
    %126 = vector.broadcast %125 : vector<1x32xf32> to vector<8x32xf32>
    %127 = arith.addf %124, %126 : vector<8x32xf32>
    %128 = arith.addf %1, %127 : vector<8x32xf32>
    %c0_51 = arith.constant 0 : index
    %c0_52 = arith.constant 0 : index
    %c0_53 = arith.constant 0 : index
    %129 = vector.load %arg8[%c0_51, %c0_52, %c0_53] : memref<1x8x32xf32, #tpu.memory_space<vmem>>, vector<1x8x32xf32>
    %130 = vector.shape_cast %129 : vector<1x8x32xf32> to vector<8x32xf32>
    %131 = vector.shape_cast %128 : vector<8x32xf32> to vector<1x8x32xf32>
    tpu.vector_store %arg8[%c0_51, %c0_52, %c0_53], %131 {strides = array<i32>} : memref<1x8x32xf32, #tpu.memory_space<vmem>>, vector<1x8x32xf32>,
    return
  }
  func.func @transform_0(%arg0: i32) -> (i32, i32, i32) {
    %c0_i32 = arith.constant 0 : i32
    %c0_i32_0 = arith.constant 0 : i32
    %c0_i32_1 = arith.constant 0 : i32
    return %arg0, %c0_i32, %c0_i32_0 : i32, i32, i32
  }
  func.func @transform_1(%arg0: i32) -> (i32, i32) {
    %c0_i32 = arith.constant 0 : i32
    %c0_i32_0 = arith.constant 0 : i32
    %c0_i32_1 = arith.constant 0 : i32
    return %c0_i32, %c0_i32_0 : i32, i32
  }
  func.func @transform_2(%arg0: i32) -> (i32, i32) {
    %c0_i32 = arith.constant 0 : i32
    %c0_i32_0 = arith.constant 0 : i32
    %c0_i32_1 = arith.constant 0 : i32
    return %c0_i32, %c0_i32_0 : i32, i32
  }
  func.func @transform_3(%arg0: i32) -> (i32, i32) {
    %c0_i32 = arith.constant 0 : i32
    %c0_i32_0 = arith.constant 0 : i32
    %c0_i32_1 = arith.constant 0 : i32
    return %c0_i32, %c0_i32_0 : i32, i32
  }
  func.func @transform_4(%arg0: i32) -> (i32, i32) {
    %c0_i32 = arith.constant 0 : i32
    %c0_i32_0 = arith.constant 0 : i32
    %c0_i32_1 = arith.constant 0 : i32
    return %c0_i32, %c0_i32_0 : i32, i32
  }
  func.func @transform_5(%arg0: i32) -> (i32, i32) {
    %c0_i32 = arith.constant 0 : i32
    %c0_i32_0 = arith.constant 0 : i32
    %c0_i32_1 = arith.constant 0 : i32
    return %c0_i32, %c0_i32_0 : i32, i32
  }
  func.func @transform_6(%arg0: i32) -> (i32, i32) {
    %c0_i32 = arith.constant 0 : i32
    %c0_i32_0 = arith.constant 0 : i32
    %c0_i32_1 = arith.constant 0 : i32
    return %c0_i32, %c0_i32_0 : i32, i32
  }
  func.func @transform_7(%arg0: i32) -> (i32, i32, i32) {
    %c0_i32 = arith.constant 0 : i32
    %c0_i32_0 = arith.constant 0 : i32
    %c0_i32_1 = arith.constant 0 : i32
    return %arg0, %c0_i32, %c0_i32_0 : i32, i32, i32
  }
}

</mosaic_0001>

<bundles_post_ra>
// kernel: transformer_block.3
= control target key start
LH: loop header
LB: loop body
LE: loop exit
PB: predicated region body
PF: predicated region fallthrough
CT: control target
= control target key end

     0   :  { %vm34_vm0 = vcmask 261120   ;;  %s580_s0 = inlined_call_operand.vmem [shape: f32[16,32], index: 0, kind: input, shape index: {}]   ;;  %s581_s1 = inlined_call_operand.vmem [shape: f32[1,32], index: 1, kind: input, shape index: {}]   ;;  %s582_s2 = inlined_call_operand.vmem [shape: f32[1,32], index: 2, kind: input, shape index: {}]   ;;  %s583_s3 = inlined_call_operand.vmem [shape: bf16[32,128], index: 3, kind: input, shape index: {}]   ;;  %s584_s4 = inlined_call_operand.vmem [shape: f32[1,128], index: 4, kind: input, shape index: {}]   ;;  %s585_s5 = inlined_call_operand.vmem [shape: bf16[128,32], index: 5, kind: input, shape index: {}]   ;;  %s586_s6 = inlined_call_operand.vmem [shape: f32[1,32], index: 6, kind: input, shape index: {}]   ;;  %s587_s7 = inlined_call_operand.hbm [shape: f32[16,32], index: 7, kind: output, shape index: {}]  }
   0x1   :  { %v487_v0 = vld [vmem:[%s580_s0] sm:$0xff]  ;;  %v492_v1 = vld [vmem:[%s580_s0 + $0x8] sm:$0xff] }
   0x2   :  { %v35_v2 = vsel %vm34_vm0, %v487_v0, 0.0  ;;  %v38_v3 = vsel %vm34_vm0, %v492_v1, 0.0 }
   0x3   :  { %36 = vadd.xlane.f32.xlu0 %v35_v2 }
   0x7   :  { %39 = vadd.xlane.f32.xlu0 %v38_v3 }
   0x8   :  { %12 = vsyncpa [#allocation5], 0  ;;  %v393_v14 = vld [vmem:[%s583_s3] sm:$0xff]   ;;  %v439_v15 = vmov 0.0   ;;  %vm440_vm1 = vmmov 0   ;;  %v394_v16 = vld [vmem:[%s583_s3 + $0x8] sm:$0xff]  }
   0x9   :  { %360 = vmatprep.subr.bf16.mxu0 %v439_v15  ;;  %96 = vst.msk [vmem:[#allocation3] sm:$0xff] %vm34_vm0, %v439_v15  ;;  %97 = vst.msk [vmem:[#allocation3 + $0x8] sm:$0xff] %vm34_vm0, %v439_v15  ;;  %364 = vmatprep.mubr.msk.bf16.mxu0 %vm440_vm1, %v439_v15  ;;  %v333_v35 = vld [vmem:[%s581_s1] ss:$0 sm:$0xff]  ;;  %v396_v46 = vld [vmem:[%s585_s5 + $0x8] sm:$0xff]   ;;  %s441_s27 = smov [#allocation4]  }
   0xa   :  { %361 = vmatpush3.bf16.msra.mxu0 %v393_v14  ;;  %368 = vmatprep.subr.bf16.mxu1 %v439_v15  ;;  %v334_v39 = vld [vmem:[%s582_s2] ss:$0 sm:$0xff]  ;;  %v397_v47 = vld [vmem:[%s585_s5 + $0x10] sm:$0xff]   ;;  %v398_v48 = vld [vmem:[%s585_s5 + $0x18] sm:$0xff]   ;;  %s322_s0 = sshll.u32 %s441_s27, 4  ;;  %s323_s0 = int_to_ptr.vmem [resolvable:$true] %s322_s0 }
   0xb   :  { %362 = vmatprep.subr.bf16.mxu0 %v439_v15  ;;  %384 = vmatprep.mubr.msk.bf16.mxu1 %vm440_vm1, %v439_v15  ;;  %v395_v45 = vld [vmem:[%s585_s5] sm:$0xff]   ;;  %v400_v50 = vld [vmem:[%s585_s5 + $0x28] sm:$0xff]   ;;  %v401_v51 = vld [vmem:[%s585_s5 + $0x30] sm:$0xff]   ;;  %s415_s28 = scalar_lea.vmem %s323_s0, 256  ;;  %p420_p1 = scmp.lt.s32.totalorder %s323_s0, %s323_s0 }
   0xc   :  { %369 = vmatpush3.bf16.msra.mxu1 %v395_v45  ;;  %v399_v49 = vld [vmem:[%s585_s5 + $0x20] sm:$0xff]   ;;  %v402_v52 = vld [vmem:[%s585_s5 + $0x38] sm:$0xff]   ;;  %p416_p0 = scmp.ne.s32.totalorder %s323_s0, %s415_s28  ;;  %p421_p2 = scmp.lt.s32.totalorder %s415_s28, %s415_s28 }
   0xd   :  { %370 = vmatprep.subr.bf16.mxu1 %v439_v15  ;;  %v335_v53 = vld [vmem:[%s584_s4] ss:$0 sm:$0xff] }
   0xe   :  { %363 = vmatpush3.bf16.msra.mxu0 %v394_v16  ;;  %p422_p3 = por %p421_p2, %p420_p1 }
  0x10   :  { %371 = vmatpush3.bf16.msra.mxu1 %v396_v46  ;;  %p423_p4 = pnand %p422_p3, %p416_p0 }
  0x11   :  { %372 = vmatprep.subr.bf16.mxu1 %v439_v15 }
  0x14   :  { %373 = vmatpush3.bf16.msra.mxu1 %v397_v47 }
  0x15   :  { %374 = vmatprep.subr.bf16.mxu1 %v439_v15 }
  0x18   :  { %375 = vmatpush3.bf16.msra.mxu1 %v398_v48 }
  0x19   :  { %376 = vmatprep.subr.bf16.mxu1 %v439_v15 }
  0x1c   :  { %377 = vmatpush3.bf16.msra.mxu1 %v399_v49 }
  0x1d   :  { %378 = vmatprep.subr.bf16.mxu1 %v439_v15 }
  0x20   :  { %379 = vmatpush3.bf16.msra.mxu1 %v400_v50 }
  0x21   :  { %380 = vmatprep.subr.bf16.mxu1 %v439_v15 }
  0x24   :  { %381 = vmatpush3.bf16.msra.mxu1 %v401_v51 }
  0x25   :  { %382 = vmatprep.subr.bf16.mxu1 %v439_v15 }
  0x28   :  { %383 = vmatpush3.bf16.msra.mxu1 %v402_v52 }
  0x90   :  { %v37_v4 = vpop.xlane.xlu0 %36 }
  0x91   :  { %v42_v5 = vmul.f32 0.03125, %v37_v4 }
  0x93   :  { %v44_v6 = vsub.f32 %v487_v0, %v42_v5 }
  0x94   :  { %v40_v7 = vpop.xlane.xlu0 %39 }
  0x95   :  { %v43_v8 = vmul.f32 0.03125, %v40_v7  ;;  %v46_v9 = vmul.f32 %v44_v6, %v44_v6 }
  0x97   :  { %v45_v10 = vsub.f32 %v492_v1, %v43_v8  ;;  %v48_v11 = vsel %vm34_vm0, %v46_v9, 0.0 }
  0x98   :  { %49 = vadd.xlane.f32.xlu1 %v48_v11 }
  0x99   :  { %v47_v12 = vmul.f32 %v45_v10, %v45_v10 }
  0x9b   :  { %v51_v13 = vsel %vm34_vm0, %v47_v12, 0.0 }
  0x9c   :  { %52 = vadd.xlane.f32.xlu1 %v51_v13 }
 0x125   :  { %v50_v17 = vpop.xlane.xlu1 %49 }
 0x126   :  { %v54_v18 = vmul.f32 0.03125, %v50_v17  ;;  %v185_v17 = vld [vmem:[#allocation3] sm:$0xff] }
 0x128   :  { %v56_v19 = vadd.f32 1e-05, %v54_v18 }
 0x129   :  { %v53_v20 = vpop.xlane.xlu1 %52 }
 0x12a   :  { %403 = vrsqrt.f32 %v56_v19  ;;  %v55_v21 = vmul.f32 0.03125, %v53_v20  ;;  %vm60_vm2 = vcmp.eq.f32.partialorder %v56_v19, inf  ;;  %v63_v25 = vand.u32 2147483648, %v56_v19 }
 0x12b   :  { %vm62_vm3 = vcmp.eq.f32.partialorder %v56_v19, 0.0 }
 0x12c   :  { %v57_v22 = vadd.f32 1e-05, %v55_v21 }
 0x12e   :  { %405 = vrsqrt.f32 %v57_v22  ;;  %vm67_vm4 = vcmp.eq.f32.partialorder %v57_v22, inf  ;;  %v70_v30 = vand.u32 2147483648, %v57_v22  ;;  %vm69_vm5 = vcmp.eq.f32.partialorder %v57_v22, 0.0 }
 0x134   :  { %v404_v23 = vpop.eup %403 }
 0x135   :  { %v59_v24 = vmul.f32 %v404_v23, %v56_v19 }
 0x137   :  { %v61_v26 = vsel %vm60_vm2, %v56_v19, %v59_v24  ;;  %v186_v19 = vld [vmem:[#allocation3 + $0x8] sm:$0xff] }
 0x138   :  { %v64_v27 = vsel %vm62_vm3, %v63_v25, %v61_v26  ;;  %v406_v28 = vpop.eup %405  ;;  %v347_v26 = vld [vmem:[%s586_s6] ss:$0 sm:$0xff] }
 0x139   :  { %407 = vrcp.f32 %v64_v27  ;;  %v66_v29 = vmul.f32 %v406_v28, %v57_v22 }
 0x13b   :  { %v68_v31 = vsel %vm67_vm4, %v57_v22, %v66_v29 }
 0x13c   :  { %v71_v32 = vsel %vm69_vm5, %v70_v30, %v68_v31 }
 0x13d   :  { %409 = vrcp.f32 %v71_v32 }
 0x143   :  { %v408_v33 = vpop.eup %407 }
 0x144   :  { %v73_v34 = vmul.f32 %v408_v33, %v44_v6 }
 0x146   :  { %v83_v37 = vmul.f32 %v333_v35, %v73_v34 }
 0x147   :  { %v410_v36 = vpop.eup %409 }
 0x148   :  { %v75_v38 = vmul.f32 %v410_v36, %v45_v10  ;;  %v92_v41 = vadd.f32 %v334_v39, %v83_v37 }
 0x14a   :  { %v84_v40 = vmul.f32 %v333_v35, %v75_v38 }
 0x14c   :  { %v93_v42 = vadd.f32 %v334_v39, %v84_v40 }
 0x14e   :  { %v94_v43 = vpack.c.bf16 %v93_v42, %v92_v41 }
 0x150   :  { %95 = vst.msk [vmem:[#allocation2] sm:$0xff] %vm34_vm0, %v94_v43 }
 0x157   :  { %v98_v44 = vld [vmem:[#allocation2] sm:$0xff] }
 0x158   :  { %365 = vmatmul.mubr.msk.bf16.vlgmr.msra.gmra.mrb[0].mxu0 %vm34_vm0, %v98_v44 }
 0x22b   :  { %v160_v54 = vpop.f32.mrb[0].mxu0 }
 0x22c   :  { %v161_v55 = vadd.f32 %v335_v53, %v160_v54  ;;  %v366_v56 = vpop.f32.mrb[1].mxu0 }
 0x22d   :  { %v163_v57 = vpop.f32.mrb[2].mxu0 }
 0x22e   :  { %v169_v58 = vmul.f32 0.044715, %v161_v55  ;;  %v164_v59 = vadd.f32 %v335_v53, %v163_v57  ;;  %v367_v60 = vpop.f32.mrb[3].mxu0  ;;  %v167_v11 = vmul.f32 0.5, %v161_v55 }
 0x230   :  { %v171_v61 = vmul.f32 %v169_v58, %v161_v55  ;;  %v170_v62 = vmul.f32 0.044715, %v164_v59  ;;  %v168_v12 = vmul.f32 0.5, %v164_v59 }
 0x232   :  { %v173_v63 = vmul.f32 %v171_v61, %v161_v55  ;;  %v172_v2 = vmul.f32 %v170_v62, %v164_v59 }
 0x234   :  { %v174_v3 = vmul.f32 %v172_v2, %v164_v59  ;;  %v175_v4 = vadd.f32 %v173_v63, %v161_v55 }
 0x236   :  { %v176_v5 = vadd.f32 %v174_v3, %v164_v59  ;;  %v177_v6 = vmul.f32 0.7978846, %v175_v4 }
 0x238   :  { %v178_v7 = vmul.f32 0.7978846, %v176_v5  ;;  %411 = vtanh.f32 %v177_v6 }
 0x23a   :  { %413 = vtanh.f32 %v178_v7 }
 0x242   :  { %v412_v8 = vpop.eup %411 }
 0x243   :  { %v181_v9 = vadd.f32 1.0, %v412_v8 }
 0x244   :  { %v414_v10 = vpop.eup %413 }
 0x245   :  { %v182_v13 = vadd.f32 1.0, %v414_v10  ;;  %v183_v14 = vmul.f32 %v181_v9, %v167_v11 }
 0x247   :  { %v184_v15 = vmul.f32 %v182_v13, %v168_v12 }
 0x249   :  { %v187_v16 = vpack.c.bf16 %v184_v15, %v183_v14 }
 0x24b   :  { %385 = vmatmul.mubr.bf16.vlgmr.msra.gmra.mrb[0].mxu1 %v187_v16 }
 0x31e   :  { %v286_v18 = vpop.f32.mrb[0].mxu1 }
 0x31f   :  { %v293_v20 = vadd.f32 %v286_v18, %v185_v17  ;;  %v386_v21 = vpop.f32.mrb[1].mxu1 }
 0x320   :  { %v289_v22 = vpop.f32.mrb[2].mxu1 }
 0x321   :  { %295 = vst.msk [vmem:[#allocation3] sm:$0xff] %vm34_vm0, %v293_v20  ;;  %v294_v23 = vadd.f32 %v289_v22, %v186_v19  ;;  %v387_v24 = vpop.f32.mrb[3].mxu1 }
 0x323   :  { %296 = vst.msk [vmem:[#allocation3 + $0x8] sm:$0xff] %vm34_vm0, %v294_v23 }
 0x328   :  { %v302_v25 = vld [vmem:[#allocation3] sm:$0xff] }
 0x329   :  { %v304_v27 = vadd.f32 %v302_v25, %v487_v0 }
 0x32a   :  { %v303_v28 = vld [vmem:[#allocation3 + $0x8] sm:$0xff] }
 0x32b   :  { %v305_v29 = vadd.f32 %v303_v28, %v492_v1  ;;  %v313_v30 = vadd.f32 %v347_v26, %v304_v27 }
 0x32d   :  { %v314_v31 = vadd.f32 %v347_v26, %v305_v29  ;;  %315 = vst.msk [vmem:[#allocation4] sm:$0xff] %vm34_vm0, %v313_v30 }
 0x32f   :  { %316 = vst.msk [vmem:[#allocation4 + $0x8] sm:$0xff] %vm34_vm0, %v314_v31 }
 0x330   :  { %426 = shalt.err (!%p423_p4)
}
 0x331   :  { %s427_s30 = scalar_lea.hbm %s587_s7, 256 }
 0x332   :  { %p428_p5 = scmp.ne.s32.totalorder %s587_s7, %s427_s30  ;;  %p431_p6 = scmp.lt.u32.totalorder %s427_s30, %s587_s7 }
 0x334   :  { %p433_p7 = pnand %p431_p6, %p428_p5 }
 0x336   :  { %436 = shalt.err (!%p433_p7)
}
 0x337   :  { %s442_s11 = smov 128   ;;  %s443_s12 = smov 8  }
 0x338   :  { %328 = dma.vmem_to_hbm [thread:$0]  %s323_s0, 256, %s587_s7, [#allocation5], %s442_s11, %s442_s11, %s443_s12  }
 0x339   :  { %437 = dma.done.wait [#allocation5], 256  }
 0x33a   :  { %438 = vsyncadd [#allocation5], 4294967040 }
 0x33b   :  { %332 = vsyncpa [#allocation5], 1 }

// kernel: transformer_block.2
= control target key start
LH: loop header
LB: loop body
LE: loop exit
PB: predicated region body
PF: predicated region fallthrough
CT: control target
= control target key end

     0   :  { %s1219_s24 = smov 0   ;;  %s1351_s0 = inlined_call_operand.vmem [shape: f32[2,8,32], index: 0, kind: input, shape index: {}]   ;;  %s1352_s1 = inlined_call_operand.vmem [shape: f32[1,32], index: 1, kind: input, shape index: {}]   ;;  %s1353_s2 = inlined_call_operand.vmem [shape: f32[1,32], index: 2, kind: input, shape index: {}]   ;;  %s1354_s3 = inlined_call_operand.vmem [shape: bf16[32,96], index: 3, kind: input, shape index: {}]   ;;  %s1355_s4 = inlined_call_operand.vmem [shape: f32[1,96], index: 4, kind: input, shape index: {}]   ;;  %s1356_s5 = inlined_call_operand.vmem [shape: bf16[32,32], index: 5, kind: input, shape index: {}]   ;;  %s1357_s6 = inlined_call_operand.vmem [shape: f32[1,32], index: 6, kind: input, shape index: {}]   ;;  %s1358_s7 = inlined_call_operand.vmem [shape: f32[2,8,32], index: 7, kind: output, shape index: {}]  }
   0x1 LB: > { %s988_s25 = sadd.s32 4294967295, %s1161_s24   ;;  %p992_p0 = scmp.ge.s32.totalorder %s1161_s24, 1  ;;  %s1161_s24 = sphi %s1219_s24, %s17_s24  }
   0x2   : > { %p236_p1 = scmp.lt.s32.totalorder %s1161_s24, 3 }
   0x4   : > { %p237_p2 = pnand %p992_p0, %p236_p1 }
   0x5   : > { %p266_p3 = scmp.lt.s32.totalorder (!%p237_p2), %s988_s25, 1  ;;  %vm276_vm0 = vcmask (!%p237_p2), 261120   ;;  %v1131_v7 = vld [vmem:[%s1354_s3] sm:$0xff] (!%p237_p2)   ;;  %v1163_v8 = vmov (!%p237_p2), 0.0   ;;  %vm1164_vm1 = vmmov (!%p237_p2), 0   ;;  %v1132_v9 = vld [vmem:[%s1354_s3 + $0x8] sm:$0xff] (!%p237_p2)   ;;  %v382_v43 = vlaneseq (!%p237_p2) }
   0x6   : > { %240 = sbr.rel (%p237_p2) target bundleno = 1832 (0x728), region = 48  ;;  %1043 = vmatprep.subr.bf16.mxu0 (!%p237_p2), %v1163_v8  ;;  %1047 = vmatprep.mubr.msk.bf16.mxu0 (!%p237_p2), %vm1164_vm1, %v1163_v8  ;;  %v995_v19 = vld [vmem:[%s1352_s1] ss:$0 sm:$0xff] (!%p237_p2)  ;;  %s1165_s17 = smov (!%p237_p2), 120   ;;  %vm390_vm4 = vcmask (!%p237_p2), 64512   ;;  %vm456_vm6 = vcmask (!%p237_p2), 1043456  }
   0x7   : > { %1044 = vmatpush3.bf16.msra.mxu0 (!%p237_p2), %v1131_v7  ;;  %1051 = vmatprep.subr.bf16.mxu1 (!%p237_p2), %v1163_v8  ;;  %v996_v21 = vld [vmem:[%s1353_s2] ss:$0 sm:$0xff] (!%p237_p2)  ;;  %s1166_s18 = smov (!%p237_p2), 96   ;;  %s1167_s19 = smov (!%p237_p2), 88   ;;  %v383_v44 = vshrl.u32 (!%p237_p2), %v382_v43, 7  ;;  %v385_v45 = vand.u32 (!%p237_p2), 127, %v382_v43 }
   0x8   : > { %1045 = vmatprep.subr.bf16.mxu0 (!%p237_p2), %v1163_v8  ;;  %1053 = vmatprep.mubr.msk.bf16.mxu1 (!%p237_p2), %vm1164_vm1, %v1163_v8  ;;  %v997_v25 = vld [vmem:[%s1355_s4] ss:$0 sm:$0xff] (!%p237_p2)  ;;  %s1168_s20 = smov (!%p237_p2), 80   ;;  %s1169_s21 = smov (!%p237_p2), 112   ;;  %vm501_vm7 = vcmask (!%p237_p2), 60416   ;;  %vm622_vm8 = vcmask (!%p237_p2), 126016  }
   0x9   : > { %s1170_s22 = smov (!%p237_p2), 72   ;;  %s1171_s23 = smov (!%p237_p2), 104   ;;  %vm386_vm5 = vcmp.gt.s32.totalorder (!%p237_p2), %v385_v45, %v383_v44  ;;  %vm743_vm9 = vcmask (!%p237_p2), 191616   ;;  %vm864_vm10 = vcmask (!%p237_p2), 257216  }
   0xa   : > { %s1172_s27 = smov (!%p237_p2), 64   ;;  %s1173_s28 = smov (!%p237_p2), 56  }
   0xb   : > { %1046 = vmatpush3.bf16.msra.mxu0 (!%p237_p2), %v1132_v9  ;;  %s1175_s30 = smov (!%p237_p2), 40   ;;  %s1176_s8 = smov (!%p237_p2), 8  }
   0xc   : > { %1057 = vmatprep.subr.bf16.mxu0 (!%p237_p2), %v1163_v8  ;;  %s1177_s13 = smov (!%p237_p2), 16   ;;  %s1178_s14 = smov (!%p237_p2), 24  }
   0xd   : > { %s1360_s25 = smov (!%p266_p3, %s988_s25), 1 }
   0xe   : > { %s993_s26 = sshll.u32 %s1360_s25, 3 }
   0xf   : > { %s269_s29 = scalar_lea.vmem %s1351_s0, %s993_s26 }
  0x10   : > { %v1235_v0 = vld [vmem:[%s269_s29] sm:$0xff]  ;;  %s1174_s29 = smov 48  }
  0x11   : > { %v277_v1 = vsel %vm276_vm0, %v1235_v0, 0.0 }
  0x12   : > { %278 = vadd.xlane.f32.xlu0 %v277_v1 }
  0x9f   : > { %v279_v2 = vpop.xlane.xlu0 %278 }
  0xa0   : > { %v281_v3 = vmul.f32 0.03125, %v279_v2 }
  0xa2   : > { %v282_v4 = vsub.f32 %v1235_v0, %v281_v3 }
  0xa4   : > { %v283_v5 = vmul.f32 %v282_v4, %v282_v4 }
  0xa6   : > { %v284_v6 = vsel %vm276_vm0, %v283_v5, 0.0 }
  0xa7   : > { %285 = vadd.xlane.f32.xlu0 %v284_v6 }
 0x134   : > { %v286_v10 = vpop.xlane.xlu0 %285 }
 0x135   : > { %v287_v11 = vmul.f32 0.03125, %v286_v10 }
 0x137   : > { %v288_v12 = vadd.f32 1e-05, %v287_v11 }
 0x139   : > { %1135 = vrsqrt.f32 %v288_v12  ;;  %vm291_vm2 = vcmp.eq.f32.partialorder %v288_v12, inf  ;;  %v294_v15 = vand.u32 2147483648, %v288_v12  ;;  %vm293_vm3 = vcmp.eq.f32.partialorder %v288_v12, 0.0 }
 0x143   : > { %v1136_v13 = vpop.eup %1135 }
 0x144   : > { %v290_v14 = vmul.f32 %v1136_v13, %v288_v12 }
 0x146   : > { %v292_v16 = vsel %vm291_vm2, %v288_v12, %v290_v14 }
 0x147   : > { %v295_v17 = vsel %vm293_vm3, %v294_v15, %v292_v16 }
 0x148   : > { %1137 = vrcp.f32 %v295_v17 }
 0x152   : > { %v1138_v18 = vpop.eup %1137 }
 0x153   : > { %v297_v20 = vmul.f32 %v1138_v18, %v282_v4 }
 0x155   : > { %v305_v22 = vmul.f32 %v995_v19, %v297_v20 }
 0x157   : > { %v313_v23 = vadd.f32 %v996_v21, %v305_v22 }
 0x159   : > { %v314_v24 = vpack.c.bf16 %v313_v23, %v313_v23 }
 0x15b   : > { %1048 = vmatmul.mubr.msk.bf16.vlgmr.msra.gmra.mrb[0].mxu0 %vm276_vm0, %v314_v24 }
 0x15c   : > { %1059 = vmatprep.mubr.msk.bf16.mxu0 %vm1164_vm1, %v1163_v8 }
 0x22e   : > { %v375_v26 = vpop.f32.mrb[0].mxu0 }
 0x22f   : > { %v376_v27 = vadd.f32 %v997_v25, %v375_v26  ;;  %v1049_v28 = vpop.f32.mrb[1].mxu0 }
 0x230   : > { %v378_v29 = vpop.f32.mrb[2].mxu0 }
 0x231   : > { %v1267_v30 = vpack.c.bf16 %v376_v27, %v376_v27  ;;  %v1050_v31 = vpop.f32.mrb[3].mxu0 }
 0x233   : > { %503 = vrot.lane.b32.xlu0 %v1267_v30, %s1165_s17  ;;  %388 = vrot.lane.b32.xlu1 %v1267_v30, %s1166_s18 }
 0x237   : > { %505 = vrot.lane.b32.xlu1 %v1267_v30, %s1167_s19  ;;  %s273_s19 = scalar_lea.vmem %s1358_s7, %s993_s26 }
 0x23b   : > { %626 = vrot.lane.b32.xlu1 %v1267_v30, %s1168_s20 }
 0x23f   : > { %624 = vrot.lane.b32.xlu1 %v1267_v30, %s1169_s21 }
 0x243   : > { %747 = vrot.lane.b32.xlu1 %v1267_v30, %s1170_s22 }
 0x247   : > { %745 = vrot.lane.b32.xlu1 %v1267_v30, %s1171_s23 }
 0x2a5   : > { %v389_v32 = vpop.permute.xlu1 %388  ;;  %v504_v37 = vpop.permute.xlu0 %503 }
 0x2a6   : > { %v395_v33 = vsel %vm390_vm4, %v389_v32, 0 }
 0x2a7   : > { %1052 = vmatpush3.bf16.xpose.msra.mxu1 %v395_v33 }
 0x2a8   : > { %1063 = vmatprep.subr.bf16.mxu1 %v1163_v8 }
 0x2a9   : > { %v506_v34 = vpop.permute.xlu1 %505 }
 0x2aa   : > { %v511_v35 = vsel %vm390_vm4, %v506_v34, 0 }
 0x2ad   : > { %v627_v36 = vpop.permute.xlu1 %626 }
 0x2ae   : > { %1054 = vmatmul.mubr.msk.bf16.vlgmr.msra.gmra.mrb[0].mxu1 %vm390_vm4, %v1267_v30  ;;  %v632_v39 = vsel %vm390_vm4, %v627_v36, 0 }
 0x2af   : > { %1064 = vmatpush3.bf16.xpose.msra.mxu1 %v511_v35  ;;  %1065 = vmatprep.mubr.msk.bf16.mxu1 %vm1164_vm1, %v1163_v8 }
 0x2b0   : > { %1075 = vmatprep.subr.bf16.mxu1 %v1163_v8 }
 0x2b1   : > { %v625_v38 = vpop.permute.xlu1 %624 }
 0x2b5   : > { %v748_v40 = vpop.permute.xlu1 %747 }
 0x2b6   : > { %1066 = vmatmul.mubr.msk.bf16.vlgmr.msra.gmra.mrb[4].mxu1 %vm390_vm4, %v504_v37  ;;  %v753_v41 = vsel %vm390_vm4, %v748_v40, 0 }
 0x2b7   : > { %1076 = vmatpush3.bf16.xpose.msra.mxu1 %v632_v39  ;;  %1077 = vmatprep.mubr.msk.bf16.mxu1 %vm1164_vm1, %v1163_v8 }
 0x2b8   : > { %1087 = vmatprep.subr.bf16.mxu1 %v1163_v8 }
 0x2b9   : > { %v746_v42 = vpop.permute.xlu1 %745 }
 0x2be   : > { %1078 = vmatmul.mubr.msk.bf16.vlgmr.msra.gmra.mrb[8].mxu1 %vm390_vm4, %v625_v38 }
 0x2bf   : > { %1088 = vmatpush3.bf16.xpose.msra.mxu1 %v753_v41  ;;  %1089 = vmatprep.mubr.msk.bf16.mxu1 %vm1164_vm1, %v1163_v8 }
 0x2c0   : > { %1099 = vmatprep.subr.bf16.mxu1 %v1163_v8 }
 0x2c6   : > { %1090 = vmatmul.mubr.msk.bf16.vlgmr.msra.gmra.mrb[12].mxu1 %vm390_vm4, %v746_v42 }
 0x2c7   : > { %1103 = vmatprep.mubr.msk.bf16.mxu1 %vm1164_vm1, %v1163_v8 }
 0x381   : > { %v431_v46 = vpop.f32.mrb[0].mxu1 }
 0x382   : > { %v437_v47 = vmul.f32 0.35355338, %v431_v46  ;;  %v1055_v48 = vpop.f32.mrb[1].mxu1 }
 0x383   : > { %v434_v49 = vpop.f32.mrb[2].mxu1 }
 0x384   : > { %v1056_v50 = vpop.f32.mrb[3].mxu1  ;;  %v438_v51 = vsel %vm386_vm5, -inf, %v437_v47 }
 0x385   : > { %v439_v52 = vsel %vm390_vm4, %v438_v51, -inf }
 0x386   : > { %440 = vmax.xlane.f32.xlu1 %v439_v52 }
 0x389   : > { %v547_v53 = vpop.f32.mrb[4].mxu1 }
 0x38a   : > { %v553_v54 = vmul.f32 0.35355338, %v547_v53  ;;  %v1067_v55 = vpop.f32.mrb[5].mxu1 }
 0x38b   : > { %v550_v56 = vpop.f32.mrb[6].mxu1 }
 0x38c   : > { %v1068_v57 = vpop.f32.mrb[7].mxu1  ;;  %v554_v58 = vsel %vm386_vm5, -inf, %v553_v54 }
 0x38d   : > { %v555_v59 = vsel %vm390_vm4, %v554_v58, -inf }
 0x38e   : > { %556 = vmax.xlane.f32.xlu0 %v555_v59 }
 0x391   : > { %v668_v60 = vpop.f32.mrb[8].mxu1 }
 0x392   : > { %v674_v61 = vmul.f32 0.35355338, %v668_v60  ;;  %v1079_v62 = vpop.f32.mrb[9].mxu1 }
 0x393   : > { %v671_v63 = vpop.f32.mrb[10].mxu1 }
 0x394   : > { %v1080_v1 = vpop.f32.mrb[11].mxu1  ;;  %v675_v2 = vsel %vm386_vm5, -inf, %v674_v61 }
 0x395   : > { %v676_v3 = vsel %vm390_vm4, %v675_v2, -inf }
 0x396   : > { %677 = vmax.xlane.f32.xlu1 %v676_v3  ;;  %v1133_v3 = vld [vmem:[%s1356_s5] sm:$0xff]  }
 0x397   : > { %1100 = vmatpush3.bf16.msra.mxu1 %v1133_v3 }
 0x398   : > { %1101 = vmatprep.subr.bf16.mxu1 %v1163_v8 }
 0x399   : > { %v789_v4 = vpop.f32.mrb[12].mxu1 }
 0x39a   : > { %v795_v5 = vmul.f32 0.35355338, %v789_v4  ;;  %v1091_v6 = vpop.f32.mrb[13].mxu1 }
 0x39b   : > { %v792_v7 = vpop.f32.mrb[14].mxu1 }
 0x39c   : > { %v1092_v9 = vpop.f32.mrb[15].mxu1  ;;  %v796_v10 = vsel %vm386_vm5, -inf, %v795_v5  ;;  %v1134_v5 = vld [vmem:[%s1356_s5 + $0x8] sm:$0xff]  }
 0x39d   : > { %v797_v11 = vsel %vm390_vm4, %v796_v10, -inf  ;;  %1102 = vmatpush3.bf16.msra.mxu1 %v1134_v5 }
 0x39e   : > { %798 = vmax.xlane.f32.xlu0 %v797_v11 }
 0x413   : > { %v441_v12 = vpop.xlane.xlu1 %440 }
 0x414   : > { %v442_v13 = vsub.f32 %v438_v51, %v441_v12 }
 0x416   : > { %v443_v14 = vmul.f32 1.442695, %v442_v13 }
 0x418   : > { %1139 = vpow2.f32 %v443_v14 }
 0x41b   : > { %v557_v15 = vpop.xlane.xlu0 %556 }
 0x41c   : > { %v558_v16 = vsub.f32 %v554_v58, %v557_v15 }
 0x41e   : > { %v559_v17 = vmul.f32 1.442695, %v558_v16 }
 0x420   : > { %1141 = vpow2.f32 %v559_v17 }
 0x422   : > { %v1140_v18 = vpop.eup %1139 }
 0x423   : > { %v445_v19 = vsel %vm390_vm4, %v1140_v18, 0.0  ;;  %v678_v27 = vpop.xlane.xlu1 %677 }
 0x424   : > { %446 = vadd.xlane.f32.xlu1 %v445_v19  ;;  %v679_v28 = vsub.f32 %v675_v2, %v678_v27  ;;  %v1012_v19 = vld [vmem:[%s1357_s6] ss:$0 sm:$0xff] }
 0x426   : > { %v680_v29 = vmul.f32 1.442695, %v679_v28 }
 0x42a   : > { %v1142_v20 = vpop.eup %1141 }
 0x42b   : > { %v799_v21 = vpop.xlane.xlu0 %798  ;;  %v561_v22 = vsel %vm390_vm4, %v1142_v20, 0.0 }
 0x42c   : > { %v800_v23 = vsub.f32 %v796_v10, %v799_v21  ;;  %562 = vadd.xlane.f32.xlu0 %v561_v22 }
 0x42e   : > { %v801_v24 = vmul.f32 1.442695, %v800_v23 }
 0x430   : > { %1143 = vpow2.f32 %v801_v24 }
 0x431   : > { %1145 = vpow2.f32 %v680_v29 }
 0x435   : > { %451 = vrot.lane.b32.xlu1 %v1267_v30, %s1172_s27 }
 0x43a   : > { %v1144_v25 = vpop.eup %1143 }
 0x43b   : > { %v803_v26 = vsel %vm390_vm4, %v1144_v25, 0.0  ;;  %v1146_v31 = vpop.eup %1145 }
 0x43c   : > { %804 = vadd.xlane.f32.xlu0 %v803_v26  ;;  %v682_v32 = vsel %vm390_vm4, %v1146_v31, 0.0 }
 0x452   : > { %567 = vrot.lane.b32.xlu0 %v1267_v30, %s1173_s28 }
 0x459   : > { %683 = vadd.xlane.f32.xlu1 %v682_v32 }
 0x46a   : > { %688 = vrot.lane.b32.xlu1 %v1267_v30, %s1174_s29 }
 0x46e   : > { %809 = vrot.lane.b32.xlu1 %v1267_v30, %s1175_s30 }
 0x4b1   : > { %v447_v33 = vpop.xlane.xlu1 %446 }
 0x4b2   : > { %1147 = vrcp.f32 %v447_v33 }
 0x4b5   : > { %v452_v34 = vpop.permute.xlu1 %451 }
 0x4b6   : > { %v458_v35 = vsel %vm456_vm6, %v452_v34, 0 }
 0x4b7   : > { %1058 = vmatpush3.bf16.msra.mxu0 %v458_v35 }
 0x4b8   : > { %1069 = vmatprep.subr.bf16.mxu0 %v1163_v8 }
 0x4b9   : > { %v563_v37 = vpop.xlane.xlu0 %562 }
 0x4ba   : > { %1149 = vrcp.f32 %v563_v37 }
 0x4bc   : > { %v1148_v36 = vpop.eup %1147 }
 0x4bd   : > { %v449_v38 = vmul.f32 %v1148_v36, %v1140_v18 }
 0x4bf   : > { %v450_v39 = vpack.c.bf16 %v449_v38, %v449_v38 }
 0x4c1   : > { %1060 = vmatmul.mubr.msk.bf16.vlgmr.msra.gmra.mrb[4].mxu0 %vm390_vm4, %v450_v39 }
 0x4c2   : > { %1071 = vmatprep.mubr.msk.bf16.mxu0 %vm1164_vm1, %v1163_v8 }
 0x4c4   : > { %v1150_v30 = vpop.eup %1149 }
 0x4c5   : > { %v565_v41 = vmul.f32 %v1150_v30, %v1142_v20 }
 0x4c7   : > { %v566_v44 = vpack.c.bf16 %v565_v41, %v565_v41 }
 0x4c9   : > { %v805_v40 = vpop.xlane.xlu0 %804 }
 0x4cd   : > { %v568_v42 = vpop.permute.xlu0 %567 }
 0x4ce   : > { %v573_v43 = vsel %vm456_vm6, %v568_v42, 0 }
 0x4cf   : > { %1070 = vmatpush3.bf16.msra.mxu0 %v573_v43 }
 0x4d0   : > { %1081 = vmatprep.subr.bf16.mxu0 %v1163_v8 }
 0x4d2   : > { %1072 = vmatmul.mubr.msk.bf16.vlgmr.msra.gmra.mrb[8].mxu0 %vm390_vm4, %v566_v44 }
 0x4d3   : > { %1083 = vmatprep.mubr.msk.bf16.mxu0 %vm1164_vm1, %v1163_v8 }
 0x4e6   : > { %v684_v45 = vpop.xlane.xlu1 %683 }
 0x4e7   : > { %1151 = vrcp.f32 %v684_v45 }
 0x4e8   : > { %1153 = vrcp.f32 %v805_v40 }
 0x4ea   : > { %v689_v46 = vpop.permute.xlu1 %688 }
 0x4eb   : > { %v694_v47 = vsel %vm456_vm6, %v689_v46, 0 }
 0x4ec   : > { %1082 = vmatpush3.bf16.msra.mxu0 %v694_v47 }
 0x4ed   : > { %1093 = vmatprep.subr.bf16.mxu0 %v1163_v8 }
 0x4ee   : > { %v810_v50 = vpop.permute.xlu1 %809 }
 0x4ef   : > { %v815_v53 = vsel %vm456_vm6, %v810_v50, 0 }
 0x4f1   : > { %v1152_v48 = vpop.eup %1151 }
 0x4f2   : > { %v686_v49 = vmul.f32 %v1152_v48, %v1146_v31  ;;  %v1154_v52 = vpop.eup %1153 }
 0x4f3   : > { %v807_v54 = vmul.f32 %v1154_v52, %v1144_v25 }
 0x4f4   : > { %v687_v51 = vpack.c.bf16 %v686_v49, %v686_v49 }
 0x4f5   : > { %v808_v55 = vpack.c.bf16 %v807_v54, %v807_v54 }
 0x4f6   : > { %1084 = vmatmul.mubr.msk.bf16.vlgmr.msra.gmra.mrb[12].mxu0 %vm390_vm4, %v687_v51 }
 0x4f7   : > { %1094 = vmatpush3.bf16.msra.mxu0 %v815_v53  ;;  %1095 = vmatprep.mubr.msk.bf16.mxu0 %vm1164_vm1, %v1163_v8 }
 0x4fe   : > { %1096 = vmatmul.mubr.msk.bf16.vlgmr.msra.gmra.mrb[16].mxu0 %vm390_vm4, %v808_v55 }
 0x594   : > { %v494_v56 = vpop.f32.mrb[4].mxu0 }
 0x595   : > { %v500_v57 = vpack.c.bf16 %v494_v56, %v494_v56  ;;  %v1061_v58 = vpop.f32.mrb[5].mxu0 }
 0x596   : > { %v497_v59 = vpop.f32.mrb[6].mxu0 }
 0x597   : > { %502 = vst.msk [vmem:[#allocation2] sm:$0xf] %vm501_vm7, %v500_v57  ;;  %v1062_v60 = vpop.f32.mrb[7].mxu0 }
 0x5a5   : > { %v609_v61 = vpop.f32.mrb[8].mxu0 }
 0x5a6   : > { %v1018_v62 = vpack.c.bf16 %v609_v61, %v609_v61  ;;  %v1073_v63 = vpop.f32.mrb[9].mxu0 }
 0x5a7   : > { %v612_v1 = vpop.f32.mrb[10].mxu0 }
 0x5a8   : > { %619 = vrot.lane.b32.xlu0 %v1018_v62, %s1176_s8  ;;  %v1074_v2 = vpop.f32.mrb[11].mxu0 }
 0x5c9   : > { %v730_v4 = vpop.f32.mrb[12].mxu0 }
 0x5ca   : > { %v1019_v6 = vpack.c.bf16 %v730_v4, %v730_v4  ;;  %v1085_v7 = vpop.f32.mrb[13].mxu0 }
 0x5cb   : > { %v733_v9 = vpop.f32.mrb[14].mxu0 }
 0x5cc   : > { %740 = vrot.lane.b32.xlu1 %v1019_v6, %s1177_s13  ;;  %v1086_v10 = vpop.f32.mrb[15].mxu0 }
 0x5d1   : > { %v851_v11 = vpop.f32.mrb[16].mxu0 }
 0x5d2   : > { %v1020_v12 = vpack.c.bf16 %v851_v11, %v851_v11  ;;  %v1097_v13 = vpop.f32.mrb[17].mxu0 }
 0x5d3   : > { %v854_v14 = vpop.f32.mrb[18].mxu0 }
 0x5d4   : > { %861 = vrot.lane.b32.xlu0 %v1020_v12, %s1178_s14  ;;  %v1098_v15 = vpop.f32.mrb[19].mxu0 }
 0x61a   : > { %v620_v16 = vpop.permute.xlu0 %619 }
 0x61b   : > { %623 = vst.msk [vmem:[#allocation2] sm:$0xf] %vm622_vm8, %v620_v16 }
 0x63e   : > { %v741_v17 = vpop.permute.xlu1 %740 }
 0x63f   : > { %744 = vst.msk [vmem:[#allocation2] sm:$0xf] %vm743_vm9, %v741_v17 }
 0x646   : > { %v862_v8 = vpop.permute.xlu0 %861 }
 0x647   : > { %865 = vst.msk [vmem:[#allocation2] sm:$0xf] %vm864_vm10, %v862_v8 }
 0x64e   : > { %v866_v18 = vld [vmem:[#allocation2] sm:$0xf] }
 0x64f   : > { %1104 = vmatmul.mubr.msk.bf16.vlgmr.msra.gmra.mrb[16].mxu1 %vm276_vm0, %v866_v18 }
 0x722   : > { %v927_v20 = vpop.f32.mrb[16].mxu1 }
 0x723   : > { %v928_v21 = vadd.f32 %v1012_v19, %v927_v20  ;;  %v1105_v22 = vpop.f32.mrb[17].mxu1 }
 0x724   : > { %v930_v23 = vpop.f32.mrb[18].mxu1 }
 0x725   : > { %v933_v24 = vadd.f32 %v928_v21, %v1235_v0  ;;  %v1106_v25 = vpop.f32.mrb[19].mxu1 }
 0x727   : > { %934 = vst.msk [vmem:[%s273_s19] sm:$0xff] %vm276_vm0, %v933_v24 }
 0x728 PF: > { %s17_s24 = sadd.s32 1, %s1161_s24  }
 0x729   : > { %p14_p4 = scmp.ge.s32.totalorder %s17_s24, 4  }
 0x72b   :  { %16 = sbr.rel (!%p14_p4) target bundleno = 1 (0x1), region = 78 }

</bundles_post_ra>
